<compile_context>
chip_gen: v6e
topology: v6e:2x2x1
jax: 0.10.0
libtpu: 0.0.40
codegen_flags: <defaults>
</compile_context>

<pallas_src>
import functools

import jax
import jax.numpy as jnp
from jax import lax
from jax.experimental import pallas as pl
from jax.experimental.pallas import tpu as pltpu


def _round_up(v, m):
    return (v + m - 1) // m * m


# ----------------------------- Pallas kernel -----------------------------


def decoder_layer_kernel(
    x_ref, y_ref,
    ln1_g, ln1_b, ln2_g, ln2_b, ln3_g, ln3_b,
    wq, bq, wk, bk, wv, bv, wo, bo,
    w1, b1, w2, b2,
    xo_ref, amap_ref,
    k_scr, v_scr, mix_scr,
    *, num_heads: int, head_qk: int, head_v: int, eps: float = 1e-5,
):
    H, CHqk, CHv = num_heads, head_qk, head_v

    def layernorm(t, g_ref, b_ref):
        # two-pass mean/variance (matches torch.nn.LayerNorm numerics; avoids
        # E[x^2]-E[x]^2 cancellation for large-mean activations).
        mu = jnp.mean(t, axis=-1, keepdims=True)
        d = t - mu
        var = jnp.mean(d * d, axis=-1, keepdims=True)
        return d * lax.rsqrt(var + eps) * g_ref[...] + b_ref[...]

    def linear(t, w_ref, b_ref):
        # weights are (in, out) bf16 (pre-packed in the wrapper); f32 MXU
        # accumulation, bias / residual math stays f32.
        return jnp.dot(t.astype(jnp.bfloat16), w_ref[...],
                       preferred_element_type=jnp.float32) + b_ref[...]

    # ---- K/V path: computed once per batch element (first query tile) and
    # carried in bf16 VMEM scratch across the sequential query-tile axis.
    @pl.when(pl.program_id(1) == 0)
    def _():
        y_n = layernorm(y_ref[0], ln3_g, ln3_b)              # norm3(y)
        k_scr[...] = linear(y_n, wk, bk).astype(jnp.bfloat16)
        v_scr[...] = linear(y_n, wv, bv).astype(jnp.bfloat16)

    x = x_ref[0]                                             # (tq, D) f32
    x_n = layernorm(x, ln1_g, ln1_b)                         # norm1(x)

    # 1/sqrt(Cqk) is folded into wq/bq wrapper-side; heads are padded so head
    # h owns lanes [h*CHqk, (h+1)*CHqk) — every slice below is a whole
    # 128-lane group (lane-aligned, no relayouts).
    q = linear(x_n, wq, bq).astype(jnp.bfloat16)             # (tq, H*CHqk)

    tq = q.shape[0]
    Lkv = k_scr.shape[0]
    contract_last = (((1,), (1,)), ((), ()))                 # q @ k^T

    amap_acc = jnp.zeros((tq, Lkv), jnp.float32)
    for h in range(H):                                       # static unroll
        qh = q[:, h * CHqk:(h + 1) * CHqk]                   # (tq,  CHqk)
        kh = k_scr[:, h * CHqk:(h + 1) * CHqk]               # (Lkv, CHqk) ref slice
        vh = v_scr[:, h * CHv:(h + 1) * CHv]                 # (Lkv, CHv)  ref slice
        s = lax.dot_general(qh, kh, contract_last,
                            preferred_element_type=jnp.float32)   # (tq, Lkv)
        # softmax over keys (torch dim=-2 of 'nqkh'); exact reciprocal so the
        # exported attn_map is unbiased.
        s = s - jnp.max(s, axis=-1, keepdims=True)
        p = jnp.exp(s)
        inv = pl.reciprocal(jnp.sum(p, axis=-1, keepdims=True), approx=False)
        p = p * inv
        amap_acc = amap_acc + p
        # write this head's mix into its lane group immediately (bounds the
        # live set; replaces the old jnp.concatenate over heads).
        mix_scr[:, h * CHv:(h + 1) * CHv] = jnp.dot(
            p.astype(jnp.bfloat16), vh,
            preferred_element_type=jnp.float32).astype(jnp.bfloat16)

    # attn_map = mean over heads -> (tq, Lkv)
    amap_ref[0] = amap_acc * (1.0 / H)

    # single lane-aligned (tq, H*CHv) @ (H*CHv, D) out-projection (padded wo
    # rows are zero, so the padded lanes contribute nothing).
    attn_out = linear(mix_scr[...], wo, bo)
    x1 = x + attn_out

    # MLP: fc1 -> QuickGELU -> fc2 (dropout is identity at p=0).
    x2_n = layernorm(x1, ln2_g, ln2_b)
    h1 = linear(x2_n, w1, b1)
    h1 = h1 * jax.nn.sigmoid(1.702 * h1)
    xo_ref[0] = x1 + linear(h1, w2, b2)


# ----------------------------- param packing -----------------------------


def pack_params(params, num_heads):
    """One-time weight preprocessing (cache the result across calls):
      * transpose Linear weights from PyTorch (out, in) to (in, out),
      * fold the 1/sqrt(Cqk) attention scale into wq / bq,
      * re-pack q/k/v columns, o rows and q/k/v biases so every head owns its
        own 128-lane group (zero-padded when Cqk/Cv < 128),
      * cast matmul weights to bf16 (f32 accumulation on the MXU).
    """
    H = num_heads
    Dqk = params['wq'].shape[0]
    Dv = params['wv'].shape[0]
    Cqk, Cv = Dqk // H, Dv // H
    CHqk, CHv = _round_up(Cqk, 128), _round_up(Cv, 128)
    scale = 1.0 / (Cqk ** 0.5)

    def pad_cols(w_t, C, CH):          # (in, H*C) -> (in, H*CH)
        if CH == C:
            return w_t
        i = w_t.shape[0]
        w = w_t.reshape(i, H, C)
        return jnp.pad(w, ((0, 0), (0, 0), (0, CH - C))).reshape(i, H * CH)

    def pad_bias(b, C, CH):            # (1, H*C) -> (1, H*CH)
        if CH == C:
            return b
        b = b.reshape(1, H, C)
        return jnp.pad(b, ((0, 0), (0, 0), (0, CH - C))).reshape(1, H * CH)

    def pad_rows(w_t, C, CH):          # (H*C, out) -> (H*CH, out)
        if CH == C:
            return w_t
        o = w_t.shape[1]
        w = w_t.reshape(H, C, o)
        return jnp.pad(w, ((0, 0), (0, CH - C), (0, 0))).reshape(H * CH, o)

    bf = lambda a: jnp.asarray(a, jnp.bfloat16)

    return {
        'CHqk': CHqk, 'CHv': CHv,
        'ln1_g': params['ln1_g'], 'ln1_b': params['ln1_b'],
        'ln2_g': params['ln2_g'], 'ln2_b': params['ln2_b'],
        'ln3_g': params['ln3_g'], 'ln3_b': params['ln3_b'],
        'wq': bf(pad_cols(params['wq'].T * scale, Cqk, CHqk)),
        'bq': pad_bias(params['bq'] * scale, Cqk, CHqk),
        'wk': bf(pad_cols(params['wk'].T, Cqk, CHqk)),
        'bk': pad_bias(params['bk'], Cqk, CHqk),
        'wv': bf(pad_cols(params['wv'].T, Cv, CHv)),
        'bv': pad_bias(params['bv'], Cv, CHv),
        'wo': bf(pad_rows(params['wo'].T, Cv, CHv)),
        'bo': params['bo'],
        'w1': bf(params['w1'].T), 'b1': params['b1'],
        'w2': bf(params['w2'].T), 'b2': params['b2'],
    }


# ----------------------------- wrapper ------------------------------------


def transformer_decoder_layer(x, y, packed, num_heads, tq=None):
    N, Lq, D = x.shape
    Ny, Lkv, Dy = y.shape
    assert Ny == N and Dy == D
    H = num_heads
    CHqk, CHv = packed['CHqk'], packed['CHv']
    Dqk_pad, Dv_pad = H * CHqk, H * CHv
    mlp_dim = packed['w1'].shape[1]

    # Query tile: bigger tiles amortize the ~0.35us/step overhead and feed the
    # MXU a fuller M dim (raise further on v6e if the VMEM audit allows).
    if tq is None:
        if Lq <= 256:
            tq = Lq
        else:
            tq = next((c for c in (256, 128, 64, 32, 16, 8) if Lq % c == 0), Lq)
    assert Lq % tq == 0, "Lq must be divisible by the query tile size"
    nq = Lq // tq

    names = ('ln1_g', 'ln1_b', 'ln2_g', 'ln2_b', 'ln3_g', 'ln3_b',
             'wq', 'bq', 'wk', 'bk', 'wv', 'bv', 'wo', 'bo',
             'w1', 'b1', 'w2', 'b2')
    param_list = [packed[k] for k in names]

    def const_spec(p):
        # Grid-invariant operand: full-array block with a constant index map;
        # single-buffered (block never changes, so double-buffering only
        # wastes VMEM — the difference between fitting and not on v7x).
        nd = p.ndim
        idx = lambda n, qi, _nd=nd: (0,) * _nd
        try:
            return pl.BlockSpec(p.shape, idx, pipeline_mode=pl.Buffered(1))
        except TypeError:   # older jax without pipeline_mode: default buffers
            return pl.BlockSpec(p.shape, idx)

    in_specs = (
        [pl.BlockSpec((1, tq, D), lambda n, qi: (n, qi, 0)),
         # y's block changes only with n; keep default double-buffering so the
         # next batch element's y prefetch overlaps the last query tile.
         pl.BlockSpec((1, Lkv, D), lambda n, qi: (n, 0, 0))]
        + [const_spec(p) for p in param_list])
    out_specs = (
        pl.BlockSpec((1, tq, D), lambda n, qi: (n, qi, 0)),
        # TODO(synk): if Lkv % 128 != 0 the attn_map store is a masked vst;
        # pad Lkv (with -inf score masking) if profiling shows it matters.
        pl.BlockSpec((1, tq, Lkv), lambda n, qi: (n, qi, 0)),
    )
    out_shape = (
        jax.ShapeDtypeStruct((N, Lq, D), jnp.float32),
        jax.ShapeDtypeStruct((N, Lq, Lkv), jnp.float32),
    )

    # ---- VMEM budget audit (replaces the old hard-coded 48 MiB) ----
    weight_bytes = sum(int(p.size) * p.dtype.itemsize for p in param_list)
    pipe_bytes = 2 * (tq * D * 4 + Lkv * D * 4 + tq * D * 4 + tq * Lkv * 4)
    scratch_bytes = (Lkv * Dqk_pad + Lkv * Dv_pad + tq * Dv_pad) * 2
    interm_bytes = (6 * tq * max(D, mlp_dim, Dqk_pad, Lkv)
                    + 3 * Lkv * max(D, Dqk_pad, Dv_pad)) * 4
    vmem_limit = weight_bytes + pipe_bytes + scratch_bytes + interm_bytes + (8 << 20)
    # floor above the resident set for tiny configs, cap well below the
    # v5e/v6e 128 MiB.  On v7x (64 MiB physical) shrink tq if the audit
    # exceeds ~40 MiB.
    vmem_limit = int(min(max(vmem_limit, 24 << 20), 96 << 20))

    flops = 2 * N * (Lq * D * Dqk_pad + Lkv * D * (Dqk_pad + Dv_pad)
                     + Lq * Lkv * (Dqk_pad + Dv_pad)
                     + Lq * Dv_pad * D + 2 * Lq * D * mlp_dim)
    transcendentals = N * Lq * (H * Lkv + mlp_dim)
    bytes_accessed = int(weight_bytes + x.size * 4 + y.size * 4
                         + N * Lq * D * 4 + N * Lq * Lkv * 4)

    kernel = functools.partial(decoder_layer_kernel, num_heads=H,
                               head_qk=CHqk, head_v=CHv)
    return pl.pallas_call(
        kernel,
        grid=(N, nq),
        in_specs=in_specs,
        out_specs=out_specs,
        out_shape=out_shape,
        scratch_shapes=[pltpu.VMEM((Lkv, Dqk_pad), jnp.bfloat16),   # K cache
                        pltpu.VMEM((Lkv, Dv_pad), jnp.bfloat16),    # V cache
                        pltpu.VMEM((tq, Dv_pad), jnp.bfloat16)],    # mix slab
        compiler_params=pltpu.CompilerParams(
            # batch axis across megacore TCs; query-tile axis is sequential
            # because it carries the K/V scratch.
            # TODO(synk): for N < num_cores on v7x, hoist the K/V projection
            # into a separate call so the query-tile axis can be "parallel".
            dimension_semantics=("parallel", "arbitrary"),
            vmem_limit_bytes=vmem_limit),
        cost_estimate=pl.CostEstimate(flops=flops,
                                      transcendentals=transcendentals,
                                      bytes_accessed=bytes_accessed),
    )(x, y, *param_list)


# ----------------------------- param init ---------------------------------


def xavier_uniform(key, out_dim, in_dim):
    limit = (6.0 / (in_dim + out_dim)) ** 0.5
    return jax.random.uniform(key, (out_dim, in_dim), jnp.float32,
                              minval=-limit, maxval=limit)


def init_params(key, in_dim, qkv_dim, mlp_dim):
    ks = jax.random.split(key, 8)
    p = {}
    # Attention projections: xavier weights, zero bias (PyTorch (out, in))
    p['wq'] = xavier_uniform(ks[0], qkv_dim, in_dim)
    p['bq'] = jnp.zeros((1, qkv_dim), jnp.float32)
    p['wk'] = xavier_uniform(ks[1], qkv_dim, in_dim)
    p['bk'] = jnp.zeros((1, qkv_dim), jnp.float32)
    p['wv'] = xavier_uniform(ks[2], qkv_dim, in_dim)
    p['bv'] = jnp.zeros((1, qkv_dim), jnp.float32)
    p['wo'] = xavier_uniform(ks[3], in_dim, qkv_dim)
    p['bo'] = jnp.zeros((1, in_dim), jnp.float32)
    # MLP: xavier weights, normal(std=1e-6) bias
    p['w1'] = xavier_uniform(ks[4], mlp_dim, in_dim)
    p['b1'] = 1e-6 * jax.random.normal(ks[5], (1, mlp_dim), jnp.float32)
    p['w2'] = xavier_uniform(ks[6], in_dim, mlp_dim)
    p['b2'] = 1e-6 * jax.random.normal(ks[7], (1, in_dim), jnp.float32)
    # LayerNorms: gamma=1, beta=0
    for name in ('ln1', 'ln2', 'ln3'):
        p[f'{name}_g'] = jnp.ones((1, in_dim), jnp.float32)
        p[f'{name}_b'] = jnp.zeros((1, in_dim), jnp.float32)
    return p


# ----------------------------- pure-JAX reference -------------------------


def reference(x, y, p, num_heads, eps=1e-5):
    def ln(t, g, b):
        mu = jnp.mean(t, -1, keepdims=True)
        var = jnp.mean((t - mu) ** 2, -1, keepdims=True)
        return (t - mu) / jnp.sqrt(var + eps) * g[0] + b[0]

    def lin(t, w, b):
        return t @ w.T + b[0]

    N, Lq, _ = x.shape
    Lkv = y.shape[1]
    H = num_heads
    y_n = ln(y, p['ln3_g'], p['ln3_b'])
    x_n = ln(x, p['ln1_g'], p['ln1_b'])
    q = lin(x_n, p['wq'], p['bq'])
    k = lin(y_n, p['wk'], p['bk'])
    v = lin(y_n, p['wv'], p['bv'])
    Cqk, Cv = q.shape[-1] // H, v.shape[-1] // H
    q = q.reshape(N, Lq, H, Cqk)
    k = k.reshape(N, Lkv, H, Cqk)
    v = v.reshape(N, Lkv, H, Cv)
    aff = jnp.einsum('nqhc,nkhc->nqkh', q / Cqk ** 0.5, k)
    aff = jax.nn.softmax(aff, axis=-2)
    attn_map = jnp.mean(aff, axis=-1)
    mix = jnp.einsum('nqlh,nlhc->nqhc', aff, v).reshape(N, Lq, H * Cv)
    attn_out = lin(mix, p['wo'], p['bo'])
    x = x + attn_out
    hmid = lin(ln(x, p['ln2_g'], p['ln2_b']), p['w1'], p['b1'])
    hmid = hmid * jax.nn.sigmoid(1.702 * hmid)
    x = x + lin(hmid, p['w2'], p['b2'])
    return x, attn_map


# ----------------------------- main ----------------------------------------


if __name__ == "__main__":
    # Small shapes consistent with the module (in_feature_dim == qkv_dim).
    N, Lq, Lkv = 2, 8, 16
    in_feature_dim = 32
    qkv_dim = 32
    num_heads = 4
    mlp_dim = round(4.0 * in_feature_dim)  # 128

    key = jax.random.PRNGKey(0)
    kx, ky, kp = jax.random.split(key, 3)
    x = jax.random.normal(kx, (N, Lq, in_feature_dim), jnp.float32)
    y = jax.random.normal(ky, (N, Lkv, in_feature_dim), jnp.float32)
    params = init_params(kp, in_feature_dim, qkv_dim, mlp_dim)

    # One-time weight packing (hoisted out of the per-call path).
    packed = jax.tree_util.tree_map(jax.block_until_ready,
                                    pack_params(params, num_heads))

    x_out, attn_map = transformer_decoder_layer(x, y, packed, num_heads)
    x_out = jax.block_until_ready(x_out)
    attn_map = jax.block_until_ready(attn_map)

    # Sanity check against a pure-JAX f32 reference of the PyTorch semantics.
    # (Kernel matmuls run bf16 with f32 accumulation -> looser tolerance.)
    x_ref, map_ref = reference(x, y, params, num_heads)
    assert x_out.shape == (N, Lq, in_feature_dim)
    assert attn_map.shape == (N, Lq, Lkv)
    assert jnp.allclose(x_out, x_ref, atol=7e-2, rtol=7e-2)
    assert jnp.allclose(attn_map, map_ref, atol=1e-2, rtol=1e-2)

    # TODO(synk): enable_batch_self_attn branch (nn.MultiheadAttention + mlp2)
    # is off by default and not implemented here.
    print("KERNEL_OK")
</pallas_src>

<mosaic_0001>
module attributes {stable_mosaic.version = 11 : i64} {
  func.func @decoder_layer_kernel(%arg0: i32, %arg1: i32, %arg2: memref<1x8x32xf32, #tpu.memory_space<vmem>>, %arg3: memref<1x16x32xf32, #tpu.memory_space<vmem>>, %arg4: memref<1x32xf32, #tpu.memory_space<vmem>>, %arg5: memref<1x32xf32, #tpu.memory_space<vmem>>, %arg6: memref<1x32xf32, #tpu.memory_space<vmem>>, %arg7: memref<1x32xf32, #tpu.memory_space<vmem>>, %arg8: memref<1x32xf32, #tpu.memory_space<vmem>>, %arg9: memref<1x32xf32, #tpu.memory_space<vmem>>, %arg10: memref<32x512xbf16, #tpu.memory_space<vmem>>, %arg11: memref<1x512xf32, #tpu.memory_space<vmem>>, %arg12: memref<32x512xbf16, #tpu.memory_space<vmem>>, %arg13: memref<1x512xf32, #tpu.memory_space<vmem>>, %arg14: memref<32x512xbf16, #tpu.memory_space<vmem>>, %arg15: memref<1x512xf32, #tpu.memory_space<vmem>>, %arg16: memref<512x32xbf16, #tpu.memory_space<vmem>>, %arg17: memref<1x32xf32, #tpu.memory_space<vmem>>, %arg18: memref<32x128xbf16, #tpu.memory_space<vmem>>, %arg19: memref<1x128xf32, #tpu.memory_space<vmem>>, %arg20: memref<128x32xbf16, #tpu.memory_space<vmem>>, %arg21: memref<1x32xf32, #tpu.memory_space<vmem>>, %arg22: memref<1x8x32xf32, #tpu.memory_space<vmem>>, %arg23: memref<1x8x16xf32, #tpu.memory_space<vmem>>, %arg24: memref<16x512xbf16, #tpu.memory_space<vmem>>, %arg25: memref<16x512xbf16, #tpu.memory_space<vmem>>, %arg26: memref<8x512xbf16, #tpu.memory_space<vmem>>) attributes {dimension_semantics = [#tpu.dimension_semantics<parallel>, #tpu.dimension_semantics<arbitrary>], iteration_bounds = array<i64: 2, 1>, scalar_prefetch = 0 : i64, scratch_operands = 3 : i64, tpu.core_type = #tpu.core_type<tc>, window_params = [{transform_indices = @transform_0, window_bounds = array<i64: 1, 8, 32>}, {transform_indices = @transform_1, window_bounds = array<i64: 1, 16, 32>}, {pipeline_mode = #tpu.pipeline_mode<synchronous>, transform_indices = @transform_2, window_bounds = array<i64: 1, 32>}, {pipeline_mode = #tpu.pipeline_mode<synchronous>, transform_indices = @transform_3, window_bounds = array<i64: 1, 32>}, {pipeline_mode = #tpu.pipeline_mode<synchronous>, transform_indices = @transform_4, window_bounds = array<i64: 1, 32>}, {pipeline_mode = #tpu.pipeline_mode<synchronous>, transform_indices = @transform_5, window_bounds = array<i64: 1, 32>}, {pipeline_mode = #tpu.pipeline_mode<synchronous>, transform_indices = @transform_6, window_bounds = array<i64: 1, 32>}, {pipeline_mode = #tpu.pipeline_mode<synchronous>, transform_indices = @transform_7, window_bounds = array<i64: 1, 32>}, {pipeline_mode = #tpu.pipeline_mode<synchronous>, transform_indices = @transform_8, window_bounds = array<i64: 32, 512>}, {pipeline_mode = #tpu.pipeline_mode<synchronous>, transform_indices = @transform_9, window_bounds = array<i64: 1, 512>}, {pipeline_mode = #tpu.pipeline_mode<synchronous>, transform_indices = @transform_10, window_bounds = array<i64: 32, 512>}, {pipeline_mode = #tpu.pipeline_mode<synchronous>, transform_indices = @transform_11, window_bounds = array<i64: 1, 512>}, {pipeline_mode = #tpu.pipeline_mode<synchronous>, transform_indices = @transform_12, window_bounds = array<i64: 32, 512>}, {pipeline_mode = #tpu.pipeline_mode<synchronous>, transform_indices = @transform_13, window_bounds = array<i64: 1, 512>}, {pipeline_mode = #tpu.pipeline_mode<synchronous>, transform_indices = @transform_14, window_bounds = array<i64: 512, 32>}, {pipeline_mode = #tpu.pipeline_mode<synchronous>, transform_indices = @transform_15, window_bounds = array<i64: 1, 32>}, {pipeline_mode = #tpu.pipeline_mode<synchronous>, transform_indices = @transform_16, window_bounds = array<i64: 32, 128>}, {pipeline_mode = #tpu.pipeline_mode<synchronous>, transform_indices = @transform_17, window_bounds = array<i64: 1, 128>}, {pipeline_mode = #tpu.pipeline_mode<synchronous>, transform_indices = @transform_18, window_bounds = array<i64: 128, 32>}, {pipeline_mode = #tpu.pipeline_mode<synchronous>, transform_indices = @transform_19, window_bounds = array<i64: 1, 32>}, {transform_indices = @transform_20, window_bounds = array<i64: 1, 8, 32>}, {transform_indices = @transform_21, window_bounds = array<i64: 1, 8, 16>}]} {
    %c0_i32 = arith.constant 0 : i32
    %0 = arith.cmpi eq, %arg1, %c0_i32 : i32
    %1 = arith.extui %0 : i1 to i32
    %c0_i32_0 = arith.constant 0 : i32
    %2 = arith.cmpi ne, %1, %c0_i32_0 : i32
    scf.if %2 {
      %c0_89 = arith.constant 0 : index
      %c0_90 = arith.constant 0 : index
      %c0_91 = arith.constant 0 : index
      %169 = vector.load %arg3[%c0_89, %c0_90, %c0_91] : memref<1x16x32xf32, #tpu.memory_space<vmem>>, vector<1x16x32xf32>
      %170 = vector.shape_cast %169 : vector<1x16x32xf32> to vector<16x32xf32>
      %cst_92 = arith.constant dense<0.000000e+00> : vector<16xf32>
      %171 = vector.multi_reduction <add>, %170, %cst_92 [1] : vector<16x32xf32> to vector<16xf32>
      %172 = vector.shape_cast %171 : vector<16xf32> to vector<16x1xf32>
      %cst_93 = arith.constant 3.200000e+01 : f32
      %173 = vector.broadcast %cst_93 : f32 to vector<16x1xf32>
      %174 = arith.divf %172, %173 : vector<16x1xf32>
      %175 = vector.broadcast %174 : vector<16x1xf32> to vector<16x32xf32>
      %176 = arith.subf %170, %175 : vector<16x32xf32>
      %177 = arith.mulf %176, %176 : vector<16x32xf32>
      %cst_94 = arith.constant dense<0.000000e+00> : vector<16xf32>
      %178 = vector.multi_reduction <add>, %177, %cst_94 [1] : vector<16x32xf32> to vector<16xf32>
      %179 = vector.shape_cast %178 : vector<16xf32> to vector<16x1xf32>
      %cst_95 = arith.constant 3.200000e+01 : f32
      %180 = vector.broadcast %cst_95 : f32 to vector<16x1xf32>
      %181 = arith.divf %179, %180 : vector<16x1xf32>
      %cst_96 = arith.constant 9.99999974E-6 : f32
      %182 = vector.broadcast %cst_96 : f32 to vector<16x1xf32>
      %183 = arith.addf %181, %182 : vector<16x1xf32>
      %184 = math.rsqrt %183 : vector<16x1xf32>
      %185 = vector.broadcast %184 : vector<16x1xf32> to vector<16x32xf32>
      %186 = arith.mulf %176, %185 : vector<16x32xf32>
      %c0_97 = arith.constant 0 : index
      %c0_98 = arith.constant 0 : index
      %187 = vector.load %arg8[%c0_97, %c0_98] : memref<1x32xf32, #tpu.memory_space<vmem>>, vector<1x32xf32>
      %188 = vector.broadcast %187 : vector<1x32xf32> to vector<16x32xf32>
      %189 = arith.mulf %186, %188 : vector<16x32xf32>
      %c0_99 = arith.constant 0 : index
      %c0_100 = arith.constant 0 : index
      %190 = vector.load %arg9[%c0_99, %c0_100] : memref<1x32xf32, #tpu.memory_space<vmem>>, vector<1x32xf32>
      %191 = vector.broadcast %190 : vector<1x32xf32> to vector<16x32xf32>
      %192 = arith.addf %189, %191 : vector<16x32xf32>
      %193 = arith.truncf %192 : vector<16x32xf32> to vector<16x32xbf16>
      %c0_101 = arith.constant 0 : index
      %c0_102 = arith.constant 0 : index
      %194 = vector.load %arg12[%c0_101, %c0_102] : memref<32x512xbf16, #tpu.memory_space<vmem>>, vector<32x512xbf16>
      %cst_103 = arith.constant dense<0.000000e+00> : vector<16x512xf32>
      %195 = tpu.matmul %193, %194, %cst_103 {dimension_numbers = #tpu.dot_dimension_numbers<[1], [0], [0], [1], [0, 0, 1, 1], [], []>} : vector<16x32xbf16>, vector<32x512xbf16>, vector<16x512xf32> -> vector<16x512xf32>
      %c0_104 = arith.constant 0 : index
      %c0_105 = arith.constant 0 : index
      %196 = vector.load %arg13[%c0_104, %c0_105] : memref<1x512xf32, #tpu.memory_space<vmem>>, vector<1x512xf32>
      %197 = vector.broadcast %196 : vector<1x512xf32> to vector<16x512xf32>
      %198 = arith.addf %195, %197 : vector<16x512xf32>
      %199 = arith.truncf %198 : vector<16x512xf32> to vector<16x512xbf16>
      %c0_106 = arith.constant 0 : index
      %c0_107 = arith.constant 0 : index
      %200 = vector.load %arg24[%c0_106, %c0_107] : memref<16x512xbf16, #tpu.memory_space<vmem>>, vector<16x512xbf16>
      tpu.vector_store %arg24[%c0_106, %c0_107], %199 {strides = array<i32>} : memref<16x512xbf16, #tpu.memory_space<vmem>>, vector<16x512xbf16>,
      %201 = arith.truncf %192 : vector<16x32xf32> to vector<16x32xbf16>
      %c0_108 = arith.constant 0 : index
      %c0_109 = arith.constant 0 : index
      %202 = vector.load %arg14[%c0_108, %c0_109] : memref<32x512xbf16, #tpu.memory_space<vmem>>, vector<32x512xbf16>
      %cst_110 = arith.constant dense<0.000000e+00> : vector<16x512xf32>
      %203 = tpu.matmul %201, %202, %cst_110 {dimension_numbers = #tpu.dot_dimension_numbers<[1], [0], [0], [1], [0, 0, 1, 1], [], []>} : vector<16x32xbf16>, vector<32x512xbf16>, vector<16x512xf32> -> vector<16x512xf32>
      %c0_111 = arith.constant 0 : index
      %c0_112 = arith.constant 0 : index
      %204 = vector.load %arg15[%c0_111, %c0_112] : memref<1x512xf32, #tpu.memory_space<vmem>>, vector<1x512xf32>
      %205 = vector.broadcast %204 : vector<1x512xf32> to vector<16x512xf32>
      %206 = arith.addf %203, %205 : vector<16x512xf32>
      %207 = arith.truncf %206 : vector<16x512xf32> to vector<16x512xbf16>
      %c0_113 = arith.constant 0 : index
      %c0_114 = arith.constant 0 : index
      %208 = vector.load %arg25[%c0_113, %c0_114] : memref<16x512xbf16, #tpu.memory_space<vmem>>, vector<16x512xbf16>
      tpu.vector_store %arg25[%c0_113, %c0_114], %207 {strides = array<i32>} : memref<16x512xbf16, #tpu.memory_space<vmem>>, vector<16x512xbf16>,
    } else {
    }
    %c0 = arith.constant 0 : index
    %c0_1 = arith.constant 0 : index
    %c0_2 = arith.constant 0 : index
    %3 = vector.load %arg2[%c0, %c0_1, %c0_2] : memref<1x8x32xf32, #tpu.memory_space<vmem>>, vector<1x8x32xf32>
    %4 = vector.shape_cast %3 : vector<1x8x32xf32> to vector<8x32xf32>
    %cst = arith.constant dense<0.000000e+00> : vector<8xf32>
    %5 = vector.multi_reduction <add>, %4, %cst [1] : vector<8x32xf32> to vector<8xf32>
    %6 = vector.shape_cast %5 : vector<8xf32> to vector<8x1xf32>
    %cst_3 = arith.constant 3.200000e+01 : f32
    %7 = vector.broadcast %cst_3 : f32 to vector<8x1xf32>
    %8 = arith.divf %6, %7 : vector<8x1xf32>
    %9 = vector.broadcast %8 : vector<8x1xf32> to vector<8x32xf32>
    %10 = arith.subf %4, %9 : vector<8x32xf32>
    %11 = arith.mulf %10, %10 : vector<8x32xf32>
    %cst_4 = arith.constant dense<0.000000e+00> : vector<8xf32>
    %12 = vector.multi_reduction <add>, %11, %cst_4 [1] : vector<8x32xf32> to vector<8xf32>
    %13 = vector.shape_cast %12 : vector<8xf32> to vector<8x1xf32>
    %cst_5 = arith.constant 3.200000e+01 : f32
    %14 = vector.broadcast %cst_5 : f32 to vector<8x1xf32>
    %15 = arith.divf %13, %14 : vector<8x1xf32>
    %cst_6 = arith.constant 9.99999974E-6 : f32
    %16 = vector.broadcast %cst_6 : f32 to vector<8x1xf32>
    %17 = arith.addf %15, %16 : vector<8x1xf32>
    %18 = math.rsqrt %17 : vector<8x1xf32>
    %19 = vector.broadcast %18 : vector<8x1xf32> to vector<8x32xf32>
    %20 = arith.mulf %10, %19 : vector<8x32xf32>
    %c0_7 = arith.constant 0 : index
    %c0_8 = arith.constant 0 : index
    %21 = vector.load %arg4[%c0_7, %c0_8] : memref<1x32xf32, #tpu.memory_space<vmem>>, vector<1x32xf32>
    %22 = vector.broadcast %21 : vector<1x32xf32> to vector<8x32xf32>
    %23 = arith.mulf %20, %22 : vector<8x32xf32>
    %c0_9 = arith.constant 0 : index
    %c0_10 = arith.constant 0 : index
    %24 = vector.load %arg5[%c0_9, %c0_10] : memref<1x32xf32, #tpu.memory_space<vmem>>, vector<1x32xf32>
    %25 = vector.broadcast %24 : vector<1x32xf32> to vector<8x32xf32>
    %26 = arith.addf %23, %25 : vector<8x32xf32>
    %27 = arith.truncf %26 : vector<8x32xf32> to vector<8x32xbf16>
    %c0_11 = arith.constant 0 : index
    %c0_12 = arith.constant 0 : index
    %28 = vector.load %arg10[%c0_11, %c0_12] : memref<32x512xbf16, #tpu.memory_space<vmem>>, vector<32x512xbf16>
    %cst_13 = arith.constant dense<0.000000e+00> : vector<8x512xf32>
    %29 = tpu.matmul %27, %28, %cst_13 {dimension_numbers = #tpu.dot_dimension_numbers<[1], [0], [0], [1], [0, 0, 1, 1], [], []>} : vector<8x32xbf16>, vector<32x512xbf16>, vector<8x512xf32> -> vector<8x512xf32>
    %c0_14 = arith.constant 0 : index
    %c0_15 = arith.constant 0 : index
    %30 = vector.load %arg11[%c0_14, %c0_15] : memref<1x512xf32, #tpu.memory_space<vmem>>, vector<1x512xf32>
    %31 = vector.broadcast %30 : vector<1x512xf32> to vector<8x512xf32>
    %32 = arith.addf %29, %31 : vector<8x512xf32>
    %33 = arith.truncf %32 : vector<8x512xf32> to vector<8x512xbf16>
    %cst_16 = arith.constant 0.000000e+00 : f32
    %34 = vector.broadcast %cst_16 : f32 to vector<8x16xf32>
    %35 = vector.extract_strided_slice %33 {offsets = [0, 0], sizes = [8, 128], strides = [1, 1]} : vector<8x512xbf16> to vector<8x128xbf16>
    %c0_17 = arith.constant 0 : index
    %c0_18 = arith.constant 0 : index
    %36 = vector.load %arg24[%c0_17, %c0_18] : memref<16x512xbf16, #tpu.memory_space<vmem>>, vector<16x128xbf16>
    %c0_19 = arith.constant 0 : index
    %c0_20 = arith.constant 0 : index
    %37 = vector.load %arg25[%c0_19, %c0_20] : memref<16x512xbf16, #tpu.memory_space<vmem>>, vector<16x128xbf16>
    %cst_21 = arith.constant dense<0.000000e+00> : vector<8x16xf32>
    %38 = tpu.matmul %35, %36, %cst_21 {dimension_numbers = #tpu.dot_dimension_numbers<[1], [1], [0], [0], [0, 0, 1, 0], [], []>} : vector<8x128xbf16>, vector<16x128xbf16>, vector<8x16xf32> -> vector<8x16xf32>
    %cst_22 = arith.constant dense<0xFF800000> : vector<8xf32>
    %39 = vector.multi_reduction <maximumf>, %38, %cst_22 [1] : vector<8x16xf32> to vector<8xf32>
    %40 = vector.shape_cast %39 : vector<8xf32> to vector<8x1xf32>
    %41 = vector.broadcast %40 : vector<8x1xf32> to vector<8x16xf32>
    %42 = arith.subf %38, %41 : vector<8x16xf32>
    %43 = math.exp %42 : vector<8x16xf32>
    %cst_23 = arith.constant dense<0.000000e+00> : vector<8xf32>
    %44 = vector.multi_reduction <add>, %43, %cst_23 [1] : vector<8x16xf32> to vector<8xf32>
    %45 = vector.shape_cast %44 : vector<8xf32> to vector<8x1xf32>
    %46 = tpu.reciprocal %45 : vector<8x1xf32> -> vector<8x1xf32>
    %47 = vector.broadcast %46 : vector<8x1xf32> to vector<8x16xf32>
    %48 = arith.mulf %43, %47 : vector<8x16xf32>
    %49 = arith.addf %34, %48 : vector<8x16xf32>
    %50 = arith.truncf %48 : vector<8x16xf32> to vector<8x16xbf16>
    %cst_24 = arith.constant dense<0.000000e+00> : vector<8x128xf32>
    %51 = tpu.matmul %50, %37, %cst_24 {dimension_numbers = #tpu.dot_dimension_numbers<[1], [0], [0], [1], [0, 0, 1, 1], [], []>} : vector<8x16xbf16>, vector<16x128xbf16>, vector<8x128xf32> -> vector<8x128xf32>
    %52 = arith.truncf %51 : vector<8x128xf32> to vector<8x128xbf16>
    %c0_25 = arith.constant 0 : index
    %c0_26 = arith.constant 0 : index
    %53 = vector.load %arg26[%c0_25, %c0_26] : memref<8x512xbf16, #tpu.memory_space<vmem>>, vector<8x128xbf16>
    tpu.vector_store %arg26[%c0_25, %c0_26], %52 {strides = array<i32>} : memref<8x512xbf16, #tpu.memory_space<vmem>>, vector<8x128xbf16>,
    %54 = vector.extract_strided_slice %33 {offsets = [0, 128], sizes = [8, 128], strides = [1, 1]} : vector<8x512xbf16> to vector<8x128xbf16>
    %c0_27 = arith.constant 0 : index
    %c128 = arith.constant 128 : index
    %55 = vector.load %arg24[%c0_27, %c128] : memref<16x512xbf16, #tpu.memory_space<vmem>>, vector<16x128xbf16>
    %c0_28 = arith.constant 0 : index
    %c128_29 = arith.constant 128 : index
    %56 = vector.load %arg25[%c0_28, %c128_29] : memref<16x512xbf16, #tpu.memory_space<vmem>>, vector<16x128xbf16>
    %cst_30 = arith.constant dense<0.000000e+00> : vector<8x16xf32>
    %57 = tpu.matmul %54, %55, %cst_30 {dimension_numbers = #tpu.dot_dimension_numbers<[1], [1], [0], [0], [0, 0, 1, 0], [], []>} : vector<8x128xbf16>, vector<16x128xbf16>, vector<8x16xf32> -> vector<8x16xf32>
    %cst_31 = arith.constant dense<0xFF800000> : vector<8xf32>
    %58 = vector.multi_reduction <maximumf>, %57, %cst_31 [1] : vector<8x16xf32> to vector<8xf32>
    %59 = vector.shape_cast %58 : vector<8xf32> to vector<8x1xf32>
    %60 = vector.broadcast %59 : vector<8x1xf32> to vector<8x16xf32>
    %61 = arith.subf %57, %60 : vector<8x16xf32>
    %62 = math.exp %61 : vector<8x16xf32>
    %cst_32 = arith.constant dense<0.000000e+00> : vector<8xf32>
    %63 = vector.multi_reduction <add>, %62, %cst_32 [1] : vector<8x16xf32> to vector<8xf32>
    %64 = vector.shape_cast %63 : vector<8xf32> to vector<8x1xf32>
    %65 = tpu.reciprocal %64 : vector<8x1xf32> -> vector<8x1xf32>
    %66 = vector.broadcast %65 : vector<8x1xf32> to vector<8x16xf32>
    %67 = arith.mulf %62, %66 : vector<8x16xf32>
    %68 = arith.addf %49, %67 : vector<8x16xf32>
    %69 = arith.truncf %67 : vector<8x16xf32> to vector<8x16xbf16>
    %cst_33 = arith.constant dense<0.000000e+00> : vector<8x128xf32>
    %70 = tpu.matmul %69, %56, %cst_33 {dimension_numbers = #tpu.dot_dimension_numbers<[1], [0], [0], [1], [0, 0, 1, 1], [], []>} : vector<8x16xbf16>, vector<16x128xbf16>, vector<8x128xf32> -> vector<8x128xf32>
    %71 = arith.truncf %70 : vector<8x128xf32> to vector<8x128xbf16>
    %c0_34 = arith.constant 0 : index
    %c128_35 = arith.constant 128 : index
    %72 = vector.load %arg26[%c0_34, %c128_35] : memref<8x512xbf16, #tpu.memory_space<vmem>>, vector<8x128xbf16>
    tpu.vector_store %arg26[%c0_34, %c128_35], %71 {strides = array<i32>} : memref<8x512xbf16, #tpu.memory_space<vmem>>, vector<8x128xbf16>,
    %73 = vector.extract_strided_slice %33 {offsets = [0, 256], sizes = [8, 128], strides = [1, 1]} : vector<8x512xbf16> to vector<8x128xbf16>
    %c0_36 = arith.constant 0 : index
    %c256 = arith.constant 256 : index
    %74 = vector.load %arg24[%c0_36, %c256] : memref<16x512xbf16, #tpu.memory_space<vmem>>, vector<16x128xbf16>
    %c0_37 = arith.constant 0 : index
    %c256_38 = arith.constant 256 : index
    %75 = vector.load %arg25[%c0_37, %c256_38] : memref<16x512xbf16, #tpu.memory_space<vmem>>, vector<16x128xbf16>
    %cst_39 = arith.constant dense<0.000000e+00> : vector<8x16xf32>
    %76 = tpu.matmul %73, %74, %cst_39 {dimension_numbers = #tpu.dot_dimension_numbers<[1], [1], [0], [0], [0, 0, 1, 0], [], []>} : vector<8x128xbf16>, vector<16x128xbf16>, vector<8x16xf32> -> vector<8x16xf32>
    %cst_40 = arith.constant dense<0xFF800000> : vector<8xf32>
    %77 = vector.multi_reduction <maximumf>, %76, %cst_40 [1] : vector<8x16xf32> to vector<8xf32>
    %78 = vector.shape_cast %77 : vector<8xf32> to vector<8x1xf32>
    %79 = vector.broadcast %78 : vector<8x1xf32> to vector<8x16xf32>
    %80 = arith.subf %76, %79 : vector<8x16xf32>
    %81 = math.exp %80 : vector<8x16xf32>
    %cst_41 = arith.constant dense<0.000000e+00> : vector<8xf32>
    %82 = vector.multi_reduction <add>, %81, %cst_41 [1] : vector<8x16xf32> to vector<8xf32>
    %83 = vector.shape_cast %82 : vector<8xf32> to vector<8x1xf32>
    %84 = tpu.reciprocal %83 : vector<8x1xf32> -> vector<8x1xf32>
    %85 = vector.broadcast %84 : vector<8x1xf32> to vector<8x16xf32>
    %86 = arith.mulf %81, %85 : vector<8x16xf32>
    %87 = arith.addf %68, %86 : vector<8x16xf32>
    %88 = arith.truncf %86 : vector<8x16xf32> to vector<8x16xbf16>
    %cst_42 = arith.constant dense<0.000000e+00> : vector<8x128xf32>
    %89 = tpu.matmul %88, %75, %cst_42 {dimension_numbers = #tpu.dot_dimension_numbers<[1], [0], [0], [1], [0, 0, 1, 1], [], []>} : vector<8x16xbf16>, vector<16x128xbf16>, vector<8x128xf32> -> vector<8x128xf32>
    %90 = arith.truncf %89 : vector<8x128xf32> to vector<8x128xbf16>
    %c0_43 = arith.constant 0 : index
    %c256_44 = arith.constant 256 : index
    %91 = vector.load %arg26[%c0_43, %c256_44] : memref<8x512xbf16, #tpu.memory_space<vmem>>, vector<8x128xbf16>
    tpu.vector_store %arg26[%c0_43, %c256_44], %90 {strides = array<i32>} : memref<8x512xbf16, #tpu.memory_space<vmem>>, vector<8x128xbf16>,
    %92 = vector.extract_strided_slice %33 {offsets = [0, 384], sizes = [8, 128], strides = [1, 1]} : vector<8x512xbf16> to vector<8x128xbf16>
    %c0_45 = arith.constant 0 : index
    %c384 = arith.constant 384 : index
    %93 = vector.load %arg24[%c0_45, %c384] : memref<16x512xbf16, #tpu.memory_space<vmem>>, vector<16x128xbf16>
    %c0_46 = arith.constant 0 : index
    %c384_47 = arith.constant 384 : index
    %94 = vector.load %arg25[%c0_46, %c384_47] : memref<16x512xbf16, #tpu.memory_space<vmem>>, vector<16x128xbf16>
    %cst_48 = arith.constant dense<0.000000e+00> : vector<8x16xf32>
    %95 = tpu.matmul %92, %93, %cst_48 {dimension_numbers = #tpu.dot_dimension_numbers<[1], [1], [0], [0], [0, 0, 1, 0], [], []>} : vector<8x128xbf16>, vector<16x128xbf16>, vector<8x16xf32> -> vector<8x16xf32>
    %cst_49 = arith.constant dense<0xFF800000> : vector<8xf32>
    %96 = vector.multi_reduction <maximumf>, %95, %cst_49 [1] : vector<8x16xf32> to vector<8xf32>
    %97 = vector.shape_cast %96 : vector<8xf32> to vector<8x1xf32>
    %98 = vector.broadcast %97 : vector<8x1xf32> to vector<8x16xf32>
    %99 = arith.subf %95, %98 : vector<8x16xf32>
    %100 = math.exp %99 : vector<8x16xf32>
    %cst_50 = arith.constant dense<0.000000e+00> : vector<8xf32>
    %101 = vector.multi_reduction <add>, %100, %cst_50 [1] : vector<8x16xf32> to vector<8xf32>
    %102 = vector.shape_cast %101 : vector<8xf32> to vector<8x1xf32>
    %103 = tpu.reciprocal %102 : vector<8x1xf32> -> vector<8x1xf32>
    %104 = vector.broadcast %103 : vector<8x1xf32> to vector<8x16xf32>
    %105 = arith.mulf %100, %104 : vector<8x16xf32>
    %106 = arith.addf %87, %105 : vector<8x16xf32>
    %107 = arith.truncf %105 : vector<8x16xf32> to vector<8x16xbf16>
    %cst_51 = arith.constant dense<0.000000e+00> : vector<8x128xf32>
    %108 = tpu.matmul %107, %94, %cst_51 {dimension_numbers = #tpu.dot_dimension_numbers<[1], [0], [0], [1], [0, 0, 1, 1], [], []>} : vector<8x16xbf16>, vector<16x128xbf16>, vector<8x128xf32> -> vector<8x128xf32>
    %109 = arith.truncf %108 : vector<8x128xf32> to vector<8x128xbf16>
    %c0_52 = arith.constant 0 : index
    %c384_53 = arith.constant 384 : index
    %110 = vector.load %arg26[%c0_52, %c384_53] : memref<8x512xbf16, #tpu.memory_space<vmem>>, vector<8x128xbf16>
    tpu.vector_store %arg26[%c0_52, %c384_53], %109 {strides = array<i32>} : memref<8x512xbf16, #tpu.memory_space<vmem>>, vector<8x128xbf16>,
    %cst_54 = arith.constant 2.500000e-01 : f32
    %111 = vector.broadcast %cst_54 : f32 to vector<8x16xf32>
    %112 = arith.mulf %106, %111 : vector<8x16xf32>
    %c0_55 = arith.constant 0 : index
    %c0_56 = arith.constant 0 : index
    %c0_57 = arith.constant 0 : index
    %113 = vector.load %arg23[%c0_55, %c0_56, %c0_57] : memref<1x8x16xf32, #tpu.memory_space<vmem>>, vector<1x8x16xf32>
    %114 = vector.shape_cast %113 : vector<1x8x16xf32> to vector<8x16xf32>
    %115 = vector.shape_cast %112 : vector<8x16xf32> to vector<1x8x16xf32>
    tpu.vector_store %arg23[%c0_55, %c0_56, %c0_57], %115 {strides = array<i32>} : memref<1x8x16xf32, #tpu.memory_space<vmem>>, vector<1x8x16xf32>,
    %c0_58 = arith.constant 0 : index
    %c0_59 = arith.constant 0 : index
    %116 = vector.load %arg26[%c0_58, %c0_59] : memref<8x512xbf16, #tpu.memory_space<vmem>>, vector<8x512xbf16>
    %c0_60 = arith.constant 0 : index
    %c0_61 = arith.constant 0 : index
    %117 = vector.load %arg16[%c0_60, %c0_61] : memref<512x32xbf16, #tpu.memory_space<vmem>>, vector<512x32xbf16>
    %cst_62 = arith.constant dense<0.000000e+00> : vector<8x32xf32>
    %118 = tpu.matmul %116, %117, %cst_62 {dimension_numbers = #tpu.dot_dimension_numbers<[1], [0], [0], [1], [0, 0, 1, 1], [], []>} : vector<8x512xbf16>, vector<512x32xbf16>, vector<8x32xf32> -> vector<8x32xf32>
    %c0_63 = arith.constant 0 : index
    %c0_64 = arith.constant 0 : index
    %119 = vector.load %arg17[%c0_63, %c0_64] : memref<1x32xf32, #tpu.memory_space<vmem>>, vector<1x32xf32>
    %120 = vector.broadcast %119 : vector<1x32xf32> to vector<8x32xf32>
    %121 = arith.addf %118, %120 : vector<8x32xf32>
    %122 = arith.addf %4, %121 : vector<8x32xf32>
    %cst_65 = arith.constant dense<0.000000e+00> : vector<8xf32>
    %123 = vector.multi_reduction <add>, %122, %cst_65 [1] : vector<8x32xf32> to vector<8xf32>
    %124 = vector.shape_cast %123 : vector<8xf32> to vector<8x1xf32>
    %cst_66 = arith.constant 3.200000e+01 : f32
    %125 = vector.broadcast %cst_66 : f32 to vector<8x1xf32>
    %126 = arith.divf %124, %125 : vector<8x1xf32>
    %127 = vector.broadcast %126 : vector<8x1xf32> to vector<8x32xf32>
    %128 = arith.subf %122, %127 : vector<8x32xf32>
    %129 = arith.mulf %128, %128 : vector<8x32xf32>
    %cst_67 = arith.constant dense<0.000000e+00> : vector<8xf32>
    %130 = vector.multi_reduction <add>, %129, %cst_67 [1] : vector<8x32xf32> to vector<8xf32>
    %131 = vector.shape_cast %130 : vector<8xf32> to vector<8x1xf32>
    %cst_68 = arith.constant 3.200000e+01 : f32
    %132 = vector.broadcast %cst_68 : f32 to vector<8x1xf32>
    %133 = arith.divf %131, %132 : vector<8x1xf32>
    %cst_69 = arith.constant 9.99999974E-6 : f32
    %134 = vector.broadcast %cst_69 : f32 to vector<8x1xf32>
    %135 = arith.addf %133, %134 : vector<8x1xf32>
    %136 = math.rsqrt %135 : vector<8x1xf32>
    %137 = vector.broadcast %136 : vector<8x1xf32> to vector<8x32xf32>
    %138 = arith.mulf %128, %137 : vector<8x32xf32>
    %c0_70 = arith.constant 0 : index
    %c0_71 = arith.constant 0 : index
    %139 = vector.load %arg6[%c0_70, %c0_71] : memref<1x32xf32, #tpu.memory_space<vmem>>, vector<1x32xf32>
    %140 = vector.broadcast %139 : vector<1x32xf32> to vector<8x32xf32>
    %141 = arith.mulf %138, %140 : vector<8x32xf32>
    %c0_72 = arith.constant 0 : index
    %c0_73 = arith.constant 0 : index
    %142 = vector.load %arg7[%c0_72, %c0_73] : memref<1x32xf32, #tpu.memory_space<vmem>>, vector<1x32xf32>
    %143 = vector.broadcast %142 : vector<1x32xf32> to vector<8x32xf32>
    %144 = arith.addf %141, %143 : vector<8x32xf32>
    %145 = arith.truncf %144 : vector<8x32xf32> to vector<8x32xbf16>
    %c0_74 = arith.constant 0 : index
    %c0_75 = arith.constant 0 : index
    %146 = vector.load %arg18[%c0_74, %c0_75] : memref<32x128xbf16, #tpu.memory_space<vmem>>, vector<32x128xbf16>
    %cst_76 = arith.constant dense<0.000000e+00> : vector<8x128xf32>
    %147 = tpu.matmul %145, %146, %cst_76 {dimension_numbers = #tpu.dot_dimension_numbers<[1], [0], [0], [1], [0, 0, 1, 1], [], []>} : vector<8x32xbf16>, vector<32x128xbf16>, vector<8x128xf32> -> vector<8x128xf32>
    %c0_77 = arith.constant 0 : index
    %c0_78 = arith.constant 0 : index
    %148 = vector.load %arg19[%c0_77, %c0_78] : memref<1x128xf32, #tpu.memory_space<vmem>>, vector<1x128xf32>
    %149 = vector.broadcast %148 : vector<1x128xf32> to vector<8x128xf32>
    %150 = arith.addf %147, %149 : vector<8x128xf32>
    %cst_79 = arith.constant 1.702000e+00 : f32
    %151 = vector.broadcast %cst_79 : f32 to vector<8x128xf32>
    %152 = arith.mulf %151, %150 : vector<8x128xf32>
    %153 = arith.negf %152 : vector<8x128xf32>
    %154 = math.exp %153 : vector<8x128xf32>
    %cst_80 = arith.constant 1.000000e+00 : f32
    %155 = vector.broadcast %cst_80 : f32 to vector<8x128xf32>
    %156 = arith.addf %155, %154 : vector<8x128xf32>
    %157 = arith.divf %155, %156 : vector<8x128xf32>
    %158 = arith.mulf %150, %157 : vector<8x128xf32>
    %159 = arith.truncf %158 : vector<8x128xf32> to vector<8x128xbf16>
    %c0_81 = arith.constant 0 : index
    %c0_82 = arith.constant 0 : index
    %160 = vector.load %arg20[%c0_81, %c0_82] : memref<128x32xbf16, #tpu.memory_space<vmem>>, vector<128x32xbf16>
    %cst_83 = arith.constant dense<0.000000e+00> : vector<8x32xf32>
    %161 = tpu.matmul %159, %160, %cst_83 {dimension_numbers = #tpu.dot_dimension_numbers<[1], [0], [0], [1], [0, 0, 1, 1], [], []>} : vector<8x128xbf16>, vector<128x32xbf16>, vector<8x32xf32> -> vector<8x32xf32>
    %c0_84 = arith.constant 0 : index
    %c0_85 = arith.constant 0 : index
    %162 = vector.load %arg21[%c0_84, %c0_85] : memref<1x32xf32, #tpu.memory_space<vmem>>, vector<1x32xf32>
    %163 = vector.broadcast %162 : vector<1x32xf32> to vector<8x32xf32>
    %164 = arith.addf %161, %163 : vector<8x32xf32>
    %165 = arith.addf %122, %164 : vector<8x32xf32>
    %c0_86 = arith.constant 0 : index
    %c0_87 = arith.constant 0 : index
    %c0_88 = arith.constant 0 : index
    %166 = vector.load %arg22[%c0_86, %c0_87, %c0_88] : memref<1x8x32xf32, #tpu.memory_space<vmem>>, vector<1x8x32xf32>
    %167 = vector.shape_cast %166 : vector<1x8x32xf32> to vector<8x32xf32>
    %168 = vector.shape_cast %165 : vector<8x32xf32> to vector<1x8x32xf32>
    tpu.vector_store %arg22[%c0_86, %c0_87, %c0_88], %168 {strides = array<i32>} : memref<1x8x32xf32, #tpu.memory_space<vmem>>, vector<1x8x32xf32>,
    return
  }
  func.func @transform_0(%arg0: i32, %arg1: i32) -> (i32, i32, i32) {
    %c0_i32 = arith.constant 0 : i32
    %c0_i32_0 = arith.constant 0 : i32
    return %arg0, %arg1, %c0_i32 : i32, i32, i32
  }
  func.func @transform_1(%arg0: i32, %arg1: i32) -> (i32, i32, i32) {
    %c0_i32 = arith.constant 0 : i32
    %c0_i32_0 = arith.constant 0 : i32
    %c0_i32_1 = arith.constant 0 : i32
    return %arg0, %c0_i32, %c0_i32_0 : i32, i32, i32
  }
  func.func @transform_2(%arg0: i32, %arg1: i32) -> (i32, i32) {
    %c0_i32 = arith.constant 0 : i32
    %c0_i32_0 = arith.constant 0 : i32
    %c0_i32_1 = arith.constant 0 : i32
    return %c0_i32, %c0_i32_0 : i32, i32
  }
  func.func @transform_3(%arg0: i32, %arg1: i32) -> (i32, i32) {
    %c0_i32 = arith.constant 0 : i32
    %c0_i32_0 = arith.constant 0 : i32
    %c0_i32_1 = arith.constant 0 : i32
    return %c0_i32, %c0_i32_0 : i32, i32
  }
  func.func @transform_4(%arg0: i32, %arg1: i32) -> (i32, i32) {
    %c0_i32 = arith.constant 0 : i32
    %c0_i32_0 = arith.constant 0 : i32
    %c0_i32_1 = arith.constant 0 : i32
    return %c0_i32, %c0_i32_0 : i32, i32
  }
  func.func @transform_5(%arg0: i32, %arg1: i32) -> (i32, i32) {
    %c0_i32 = arith.constant 0 : i32
    %c0_i32_0 = arith.constant 0 : i32
    %c0_i32_1 = arith.constant 0 : i32
    return %c0_i32, %c0_i32_0 : i32, i32
  }
  func.func @transform_6(%arg0: i32, %arg1: i32) -> (i32, i32) {
    %c0_i32 = arith.constant 0 : i32
    %c0_i32_0 = arith.constant 0 : i32
    %c0_i32_1 = arith.constant 0 : i32
    return %c0_i32, %c0_i32_0 : i32, i32
  }
  func.func @transform_7(%arg0: i32, %arg1: i32) -> (i32, i32) {
    %c0_i32 = arith.constant 0 : i32
    %c0_i32_0 = arith.constant 0 : i32
    %c0_i32_1 = arith.constant 0 : i32
    return %c0_i32, %c0_i32_0 : i32, i32
  }
  func.func @transform_8(%arg0: i32, %arg1: i32) -> (i32, i32) {
    %c0_i32 = arith.constant 0 : i32
    %c0_i32_0 = arith.constant 0 : i32
    %c0_i32_1 = arith.constant 0 : i32
    return %c0_i32, %c0_i32_0 : i32, i32
  }
  func.func @transform_9(%arg0: i32, %arg1: i32) -> (i32, i32) {
    %c0_i32 = arith.constant 0 : i32
    %c0_i32_0 = arith.constant 0 : i32
    %c0_i32_1 = arith.constant 0 : i32
    return %c0_i32, %c0_i32_0 : i32, i32
  }
  func.func @transform_10(%arg0: i32, %arg1: i32) -> (i32, i32) {
    %c0_i32 = arith.constant 0 : i32
    %c0_i32_0 = arith.constant 0 : i32
    %c0_i32_1 = arith.constant 0 : i32
    return %c0_i32, %c0_i32_0 : i32, i32
  }
  func.func @transform_11(%arg0: i32, %arg1: i32) -> (i32, i32) {
    %c0_i32 = arith.constant 0 : i32
    %c0_i32_0 = arith.constant 0 : i32
    %c0_i32_1 = arith.constant 0 : i32
    return %c0_i32, %c0_i32_0 : i32, i32
  }
  func.func @transform_12(%arg0: i32, %arg1: i32) -> (i32, i32) {
    %c0_i32 = arith.constant 0 : i32
    %c0_i32_0 = arith.constant 0 : i32
    %c0_i32_1 = arith.constant 0 : i32
    return %c0_i32, %c0_i32_0 : i32, i32
  }
  func.func @transform_13(%arg0: i32, %arg1: i32) -> (i32, i32) {
    %c0_i32 = arith.constant 0 : i32
    %c0_i32_0 = arith.constant 0 : i32
    %c0_i32_1 = arith.constant 0 : i32
    return %c0_i32, %c0_i32_0 : i32, i32
  }
  func.func @transform_14(%arg0: i32, %arg1: i32) -> (i32, i32) {
    %c0_i32 = arith.constant 0 : i32
    %c0_i32_0 = arith.constant 0 : i32
    %c0_i32_1 = arith.constant 0 : i32
    return %c0_i32, %c0_i32_0 : i32, i32
  }
  func.func @transform_15(%arg0: i32, %arg1: i32) -> (i32, i32) {
    %c0_i32 = arith.constant 0 : i32
    %c0_i32_0 = arith.constant 0 : i32
    %c0_i32_1 = arith.constant 0 : i32
    return %c0_i32, %c0_i32_0 : i32, i32
  }
  func.func @transform_16(%arg0: i32, %arg1: i32) -> (i32, i32) {
    %c0_i32 = arith.constant 0 : i32
    %c0_i32_0 = arith.constant 0 : i32
    %c0_i32_1 = arith.constant 0 : i32
    return %c0_i32, %c0_i32_0 : i32, i32
  }
  func.func @transform_17(%arg0: i32, %arg1: i32) -> (i32, i32) {
    %c0_i32 = arith.constant 0 : i32
    %c0_i32_0 = arith.constant 0 : i32
    %c0_i32_1 = arith.constant 0 : i32
    return %c0_i32, %c0_i32_0 : i32, i32
  }
  func.func @transform_18(%arg0: i32, %arg1: i32) -> (i32, i32) {
    %c0_i32 = arith.constant 0 : i32
    %c0_i32_0 = arith.constant 0 : i32
    %c0_i32_1 = arith.constant 0 : i32
    return %c0_i32, %c0_i32_0 : i32, i32
  }
  func.func @transform_19(%arg0: i32, %arg1: i32) -> (i32, i32) {
    %c0_i32 = arith.constant 0 : i32
    %c0_i32_0 = arith.constant 0 : i32
    %c0_i32_1 = arith.constant 0 : i32
    return %c0_i32, %c0_i32_0 : i32, i32
  }
  func.func @transform_20(%arg0: i32, %arg1: i32) -> (i32, i32, i32) {
    %c0_i32 = arith.constant 0 : i32
    %c0_i32_0 = arith.constant 0 : i32
    return %arg0, %arg1, %c0_i32 : i32, i32, i32
  }
  func.func @transform_21(%arg0: i32, %arg1: i32) -> (i32, i32, i32) {
    %c0_i32 = arith.constant 0 : i32
    %c0_i32_0 = arith.constant 0 : i32
    return %arg0, %arg1, %c0_i32 : i32, i32, i32
  }
}

</mosaic_0001>

<bundles_post_ra>
// kernel: tpu_custom_call.1
= control target key start
LH: loop header
LB: loop body
LE: loop exit
PB: predicated region body
PF: predicated region fallthrough
CT: control target
= control target key end

     0   :  { %s3684_s0 = inlined_call_operand.vmem [shape: f32[2,8,32], index: 0, kind: input, shape index: {}]   ;;  %s3685_s1 = inlined_call_operand.vmem [shape: f32[2,16,32], index: 1, kind: input, shape index: {}]   ;;  %s3686_s2 = inlined_call_operand.vmem [shape: f32[1,32], index: 2, kind: input, shape index: {}]   ;;  %s3687_s3 = inlined_call_operand.vmem [shape: f32[1,32], index: 3, kind: input, shape index: {}]   ;;  %s3688_s4 = inlined_call_operand.vmem [shape: f32[1,32], index: 4, kind: input, shape index: {}]   ;;  %s3689_s5 = inlined_call_operand.vmem [shape: f32[1,32], index: 5, kind: input, shape index: {}]   ;;  %s3690_s6 = inlined_call_operand.vmem [shape: f32[1,32], index: 6, kind: input, shape index: {}]   ;;  %s3691_s7 = inlined_call_operand.vmem [shape: f32[1,32], index: 7, kind: input, shape index: {}]   ;;  %s3692_s8 = inlined_call_operand.vmem [shape: bf16[32,512], index: 8, kind: input, shape index: {}]   ;;  %s3693_s9 = inlined_call_operand.vmem [shape: f32[1,512], index: 9, kind: input, shape index: {}]   ;;  %s3694_s10 = inlined_call_operand.vmem [shape: bf16[32,512], index: 10, kind: input, shape index: {}]   ;;  %s3695_s11 = inlined_call_operand.vmem [shape: f32[1,512], index: 11, kind: input, shape index: {}]   ;;  %s3696_s12 = inlined_call_operand.vmem [shape: bf16[32,512], index: 12, kind: input, shape index: {}]   ;;  %s3697_s13 = inlined_call_operand.vmem [shape: f32[1,512], index: 13, kind: input, shape index: {}]   ;;  %s3698_s14 = inlined_call_operand.vmem [shape: bf16[512,32], index: 14, kind: input, shape index: {}]   ;;  %s3699_s15 = inlined_call_operand.vmem [shape: f32[1,32], index: 15, kind: input, shape index: {}]   ;;  %s3700_s16 = inlined_call_operand.vmem [shape: bf16[32,128], index: 16, kind: input, shape index: {}]   ;;  %s3701_s17 = inlined_call_operand.vmem [shape: f32[1,128], index: 17, kind: input, shape index: {}]   ;;  %s3702_s18 = inlined_call_operand.vmem [shape: bf16[128,32], index: 18, kind: input, shape index: {}]   ;;  %s3703_s19 = inlined_call_operand.vmem [shape: f32[1,32], index: 19, kind: input, shape index: {}]   ;;  %s3704_s20 = inlined_call_operand.hbm [shape: f32[2,8,32], index: 20, kind: output, shape index: {0}]   ;;  %s3705_s21 = inlined_call_operand.hbm [shape: f32[2,8,16], index: 21, kind: output, shape index: {1}]  }
   0x1   :  { %3715 = sst [smem:[#allocation15_spill]] %s3684_s0 }
   0x2   :  { %3716 = sst [smem:[#allocation16_spill]] %s3685_s1 }
   0x3   :  { %3717 = sst [smem:[#allocation17_spill]] %s3686_s2 }
   0x4   :  { %3718 = sst [smem:[#allocation18_spill]] %s3687_s3 }
   0x5   :  { %3719 = sst [smem:[#allocation19_spill]] %s3688_s4 }
   0x6   :  { %3720 = sst [smem:[#allocation20_spill]] %s3689_s5 }
   0x7   :  { %3721 = sst [smem:[#allocation21_spill]] %s3690_s6 }
   0x8   :  { %3722 = sst [smem:[#allocation22_spill]] %s3691_s7 }
   0x9   :  { %3723 = sst [smem:[#allocation23_spill]] %s3692_s8 }
   0xa   :  { %3724 = sst [smem:[#allocation24_spill]] %s3693_s9 }
   0xb   :  { %3725 = sst [smem:[#allocation25_spill]] %s3703_s19 }
   0xc   :  { %3726 = sst [smem:[#allocation26_spill]] %s3704_s20 }
   0xd   :  { %3727 = sst [smem:[#allocation27_spill]] %s3705_s21 }
   0xe   :  { %27 = vsyncpa [#allocation6], 0 }
   0xf   :  { %29 = vsyncpa [#allocation6 + $0x1], 0 }
  0x10   :  { %30 = vsyncpa [#allocation8], 0 }
  0x11   :  { %32 = vsyncpa [#allocation8 + $0x1], 0  ;;  %s3199_s2 = smov 0   ;;  %s3201_s25 = smov 0  }
  0x12   :  { %s3203_s26 = smov 0   ;;  %s3205_s27 = smov 0  }
  0x13   :  { %s3207_s3 = smov 0   ;;  %s3209_s28 = smov 0  }
  0x14 LB: > { %3728 = sst [smem:[#allocation11_spill]] %s3062_s2  ;;  %s2514_s29 = sadd.s32 4294967295, %s3082_s28   ;;  %s3082_s28 = sphi %s3209_s28, %s38_s28   ;;  %s3078_s3 = sphi %s3207_s3, %s3754_s3   ;;  %s3074_s27 = sphi %s3205_s27, %s3753_s27   ;;  %s3070_s26 = sphi %s3203_s26, %s3757_s26   ;;  %s3066_s25 = sphi %s3201_s25, %s3756_s25   ;;  %s3062_s2 = sphi %s3199_s2, %s3755_s2  }
  0x15   : > { %3729 = sst [smem:[#allocation12_spill]] %s3078_s3  ;;  %s2515_s0 = sadd.s32 4294967294, %s3082_s28  }
  0x16   : > { %s50_s4 = sadd.s32 1, %s3078_s3  ;;  %s491_s30 = sadd.s32 1, %s3070_s26 }
  0x17   : > { %p52_p0 = scmp.ge.s32.totalorder %s50_s4, 2  ;;  %p501_p1 = scmp.ne.s32.totalorder %s3070_s26, %s3066_s25 }
  0x18   : > { %p502_p2 = scmp.eq.s32.totalorder %s2514_s29, 1  ;;  %p507_p3 = scmp.ne.s32.totalorder %s3066_s25, %s3062_s2 }
  0x19   : > { %s3759_s4 = smov (%p52_p0, %s50_s4), 0  ;;  %p508_p5 = scmp.eq.s32.totalorder %s2515_s0, 1 }
  0x1a   : > { %3730 = sst [smem:[#allocation13_spill]] %s3759_s4  ;;  %p3239_p4 = por %p502_p2, %p501_p1 }
  0x1b   : > { %s486_s22 = ssub.s32 %s3078_s3, %s3759_s4  ;;  %p2518_p6 = scmp.ge.s32.totalorder %s3082_s28, 1 }
  0x1c   : > { %p489_p7 = scmp.eq.s32.totalorder %s486_s22, 0  ;;  %p3246_p8 = por %p508_p5, %p507_p3 }
  0x1d   : > { %p626_p9 = scmp.lt.s32.totalorder %s3082_s28, 3 }
  0x1e   : > { %s3732_s23 = scalar_select %p3246_p8, 1, 0 }
  0x1f   : > { %s3252_s1 = scalar_select %p489_p7, %s3070_s26, %s491_s30  }
  0x20   : > { %3733 = sst [smem:[#allocation14_spill]] %s3732_s23  ;;  %p627_p10 = pnand %p2518_p6, %p626_p9 }
  0x21   : > { %p698_p11 = scmp.lt.s32.totalorder (!%p627_p10), %s3074_s27, 1  ;;  %s3734_s3 = sld [smem:[#allocation16_spill]] (!%p627_p10) }
  0x22   : > { %630 = sbr.rel (%p627_p10) target bundleno = 2271 (0x8df), region = 100  ;;  %s3735_s21 = sld [smem:[#allocation15_spill]] (!%p627_p10) }
  0x23   : > { %s3736_s8 = sld [smem:[#allocation23_spill]] (!%p627_p10)  ;;  %s3087_s0 = smov (!%p627_p10), [#allocation7]  }
  0x24   : > { %s3737_s6 = sld [smem:[#allocation21_spill]] (!%p627_p10) }
  0x25   : > { %s3738_s7 = sld [smem:[#allocation22_spill]] (!%p627_p10) }
  0x26   : > { %s3741_s9 = sld [smem:[#allocation24_spill]] (!%p627_p10) }
  0x27   : > { %s699_s24 = scalar_select %p698_p11, %s3074_s27, 1  ;;  %vm717_vm0 = vcmask 261120   ;;  %v2857_v21 = vld [vmem:[%s3694_s10 + $0x24] ss:$16 sps:$4 sm:$0xff]   ;;  %v2860_v22 = vld [vmem:[%s3696_s12 + $0x2c] ss:$16 sps:$4 sm:$0xff]  }
  0x28   : > { %v2859_v23 = vld [vmem:[%s3694_s10 + $0x20] ss:$16 sps:$4 sm:$0xff]   ;;  %v2862_v24 = vld [vmem:[%s3696_s12 + $0x28] ss:$16 sps:$4 sm:$0xff]   ;;  %849 = vmatprep.subr.bf16.mxu0 %v2857_v21  ;;  %1076 = vmatprep.subr.bf16.mxu1 %v2860_v22  ;;  %v2863_v25 = vld [vmem:[%s3694_s10 + $0x4] ss:$16 sps:$4 sm:$0xff]  }
  0x29   : > { %s2637_s29 = sshll.u32 %s699_s24, 4  ;;  %s2521_s2 = sshll.u32 %s699_s24, 3  ;;  %v2866_v26 = vld [vmem:[%s3696_s12 + $0xc] ss:$16 sps:$4 sm:$0xff]   ;;  %850 = vmatpush1.bf16.msra.mxu0 %v2859_v23  ;;  %1077 = vmatpush1.bf16.msra.mxu1 %v2862_v24  ;;  %v2865_v27 = vld [vmem:[%s3694_s10] ss:$16 sps:$4 sm:$0xff]  }
  0x2a   : > { %s709_s22 = scalar_lea.vmem %s3734_s3, %s2637_s29  ;;  %s3262_s23 = scalar_lea.vmem %s3735_s21, %s2521_s2  ;;  %v2868_v28 = vld [vmem:[%s3696_s12 + $0x8] ss:$16 sps:$4 sm:$0xff]   ;;  %851 = vmatprep.subr.bf16.mxu0 %v2863_v25  ;;  %1078 = vmatprep.subr.bf16.mxu1 %v2866_v26  ;;  %v2871_v29 = vld [vmem:[%s3694_s10 + $0x2c] ss:$16 sps:$4 sm:$0xff]   ;;  %v3084_v30 = vmov 0   ;;  %vm3086_vm1 = vmmov 0  }
  0x2b   : > { %v715_v0 = vld [vmem:[%s709_s22] sm:$0xff]  ;;  %v716_v1 = vld [vmem:[%s709_s22 + $0x8] sm:$0xff]  ;;  %869 = vmatprep.mubr.bf16.mxu0 %v3084_v30  ;;  %1096 = vmatprep.mubr.bf16.mxu1 %v3084_v30  ;;  %s3739_s3 = sld [smem:[#allocation17_spill]]  ;;  %vm1377_vm2 = vcmask 130048   ;;  %s3453_s22 = sand.u32 1, %s3066_s25  }
  0x2c   : > { %v1135_v2 = vld [vmem:[%s3262_s23] sm:$0xff]  ;;  %v718_v3 = vsel %vm717_vm0, %v715_v0, 0.0  ;;  %v721_v5 = vsel %vm717_vm0, %v716_v1, 0.0  ;;  %v2874_v31 = vld [vmem:[%s3736_s8 + $0x2c] ss:$16 sps:$4 sm:$0xff]   ;;  %s3712_s19 = sshll.u32 %s3453_s22, 3 }
  0x2d   : > { %v1137_v4 = vsel %vm717_vm0, %v1135_v2, 0.0  ;;  %719 = vadd.xlane.f32.xlu0 %v718_v3  ;;  %852 = vmatpush1.bf16.msra.mxu0 %v2865_v27  ;;  %v2524_v43 = vld [vmem:[%s3737_s6] ss:$0 sm:$0xff]  ;;  %v2869_v54 = vld [vmem:[%s3694_s10 + $0x28] ss:$16 sps:$4 sm:$0xff]   ;;  %s3459_s20 = scalar_lea.vmem [#allocation7], %s3712_s19 }
  0x2e   : > { %1138 = vadd.xlane.f32.xlu1 %v1137_v4  ;;  %1079 = vmatpush1.bf16.msra.mxu1 %v2868_v28  ;;  %v2525_v48 = vld [vmem:[%s3738_s7] ss:$0 sm:$0xff]  ;;  %v2872_v55 = vld [vmem:[%s3736_s8 + $0x28] ss:$16 sps:$4 sm:$0xff]   ;;  %v2877_v57 = vld [vmem:[%s3694_s10 + $0xc] ss:$16 sps:$4 sm:$0xff]  }
  0x2f   : > { %892 = vmatprep.subr.bf16.mxu0 %v2871_v29  ;;  %1294 = vmatprep.subr.bf16.mxu1 %v2874_v31  ;;  %v2880_v58 = vld [vmem:[%s3736_s8 + $0xc] ss:$16 sps:$4 sm:$0xff]   ;;  %v2875_v61 = vld [vmem:[%s3694_s10 + $0x8] ss:$16 sps:$4 sm:$0xff]   ;;  %v2883_v63 = vld [vmem:[%s3696_s12 + $0x24] ss:$16 sps:$4 sm:$0xff]  }
  0x30   : > { %v2878_v62 = vld [vmem:[%s3736_s8 + $0x8] ss:$16 sps:$4 sm:$0xff]   ;;  %v2886_v3 = vld [vmem:[%s3696_s12 + $0x4] ss:$16 sps:$4 sm:$0xff]   ;;  %v2884_v4 = vld [vmem:[%s3696_s12] ss:$16 sps:$4 sm:$0xff]  }
  0x31   : > { %722 = vadd.xlane.f32.xlu0 %v721_v5  ;;  %v2554_v51 = vld [vmem:[%s3739_s3] ss:$0 sm:$0xff]  ;;  %s3740_s3 = sld [smem:[#allocation18_spill]]  ;;  %v2889_v5 = vld [vmem:[%s3736_s8 + $0x24] ss:$16 sps:$4 sm:$0xff]   ;;  %s2398_s24 = sshll.u32 %s3459_s20, 4  ;;  %s2399_s24 = int_to_ptr.vmem [resolvable:$true] %s2398_s24 }
  0x32   : > { %s3742_s19 = sld [smem:[#allocation19_spill]]  ;;  %s2976_s29 = scalar_lea.vmem %s2399_s24, 128 }
  0x33   : > { %p2977_p12 = scmp.ne.s32.totalorder %s2399_s24, %s2976_s29  ;;  %s2980_s6 = sshll.u32 %s3087_s0, 4  ;;  %s2981_s6 = int_to_ptr.vmem [resolvable:$false] %s2980_s6 }
  0x34   : > { %s2982_s7 = scalar_lea.vmem %s2981_s6, 256  ;;  %p2983_p1 = scmp.lt.s32.totalorder %s2399_s24, %s2981_s6 }
  0x35   : > { %p2978_p13 = pnand %p2977_p12, %p3239_p4  ;;  %p2984_p2 = scmp.lt.s32.totalorder %s2982_s7, %s2976_s29 }
  0x37   : > { %v2555_v60 = vld [vmem:[%s3740_s3] ss:$0 sm:$0xff]  ;;  %s3743_s3 = sld [smem:[#allocation20_spill]]  ;;  %p2979_p0 = pneg %p2978_p13 }
  0x38   : > { %p2985_p3 = por %p2984_p2, %p2983_p1 }
  0x3a   : > { %p2986_p5 = pnand %p2985_p3, %p2979_p0 }
  0xb6   : > { %v720_v6 = vpop.xlane.xlu0 %719 }
  0xb7   : > { %v1139_v7 = vpop.xlane.xlu1 %1138  ;;  %v725_v8 = vmul.f32 0.03125, %v720_v6  ;;  %v2887_v6 = vld [vmem:[%s3736_s8 + $0x20] ss:$16 sps:$4 sm:$0xff]  }
  0xb8   : > { %v1141_v9 = vmul.f32 0.03125, %v1139_v7  ;;  %v2892_v7 = vld [vmem:[%s3736_s8 + $0x4] ss:$16 sps:$4 sm:$0xff]  }
  0xb9   : > { %v727_v10 = vsub.f32 %v715_v0, %v725_v8  ;;  %v2890_v8 = vld [vmem:[%s3736_s8] ss:$16 sps:$4 sm:$0xff]  }
  0xba   : > { %v1142_v11 = vsub.f32 %v1135_v2, %v1141_v9  ;;  %v723_v12 = vpop.xlane.xlu0 %722  ;;  %v3085_v9 = vmov 0.0  }
  0xbb   : > { %v726_v13 = vmul.f32 0.03125, %v723_v12  ;;  %v729_v14 = vmul.f32 %v727_v10, %v727_v10 }
  0xbc   : > { %v1143_v15 = vmul.f32 %v1142_v11, %v1142_v11 }
  0xbd   : > { %v728_v16 = vsub.f32 %v716_v1, %v726_v13  ;;  %v731_v17 = vsel %vm717_vm0, %v729_v14, 0.0  ;;  %v2881_v1 = vld [vmem:[%s3696_s12 + $0x20] ss:$16 sps:$4 sm:$0xff]  }
  0xbe   : > { %732 = vadd.xlane.f32.xlu1 %v731_v17  ;;  %v1144_v19 = vsel %vm717_vm0, %v1143_v15, 0.0  ;;  %v959_v17 = vld [vmem:[%s3697_s13] sm:$0xf] }
  0xbf   : > { %v730_v18 = vmul.f32 %v728_v16, %v728_v16 }
  0xc1   : > { %v734_v20 = vsel %vm717_vm0, %v730_v18, 0.0 }
  0xc2   : > { %735 = vadd.xlane.f32.xlu0 %v734_v20  ;;  %1145 = vadd.xlane.f32.xlu1 %v1144_v19 }
 0x147   : > { %v733_v32 = vpop.xlane.xlu1 %732 }
 0x148   : > { %v737_v33 = vmul.f32 0.03125, %v733_v32 }
 0x14a   : > { %v739_v34 = vadd.f32 1e-05, %v737_v33 }
 0x14b   : > { %v736_v35 = vpop.xlane.xlu0 %735  ;;  %v1146_v36 = vpop.xlane.xlu1 %1145 }
 0x14c   : > { %2947 = vrsqrt.f32 %v739_v34  ;;  %v738_v37 = vmul.f32 0.03125, %v736_v35  ;;  %v1147_v38 = vmul.f32 0.03125, %v1146_v36 }
 0x14e   : > { %v740_v39 = vadd.f32 1e-05, %v738_v37  ;;  %v1148_v40 = vadd.f32 1e-05, %v1147_v38 }
 0x150   : > { %2949 = vrsqrt.f32 %v740_v39 }
 0x151   : > { %2951 = vrsqrt.f32 %v1148_v40 }
 0x159   : > { %v2948_v41 = vpop.eup %2947 }
 0x15a   : > { %v743_v42 = vmul.f32 %v2948_v41, %v727_v10  ;;  %v774_v10 = vlaneseq }
 0x15c   : > { %v752_v47 = vmul.f32 %v2524_v43, %v743_v42 }
 0x15d   : > { %v2950_v44 = vpop.eup %2949 }
 0x15e   : > { %v2952_v45 = vpop.eup %2951  ;;  %v744_v46 = vmul.f32 %v2950_v44, %v728_v16  ;;  %v761_v52 = vadd.f32 %v2525_v48, %v752_v47  ;;  %v772_v16 = vld [vmem:[%s3695_s11] sm:$0xf] }
 0x15f   : > { %v1150_v49 = vmul.f32 %v2952_v45, %v1142_v11  ;;  %v775_v11 = vshrl.u32 %v774_v10, 7 }
 0x160   : > { %v753_v50 = vmul.f32 %v2524_v43, %v744_v46 }
 0x161   : > { %v1158_v59 = vmul.f32 %v2554_v51, %v1150_v49  ;;  %v3373_v12 = vsub.s32 0, %v775_v11  ;;  %v3375_v13 = vsub.s32 2, %v775_v11  ;;  %v3377_v14 = vsub.s32 1, %v775_v11 }
 0x162   : > { %v762_v53 = vadd.f32 %v2525_v48, %v753_v50  ;;  %v3379_v15 = vsub.s32 3, %v775_v11 }
 0x163   : > { %v1166_v0 = vadd.f32 %v2555_v60, %v1158_v59  ;;  %v777_v18 = vrot.slane %v772_v16, %v3373_v12  ;;  %v972_v19 = vrot.slane %v959_v17, %v3375_v13  ;;  %v781_v20 = vrot.slane %v772_v16, %v3377_v14 }
 0x164   : > { %v763_v56 = vpack.c.bf16 %v762_v53, %v761_v52  ;;  %v976_v21 = vrot.slane %v959_v17, %v3379_v15  ;;  %v785_v36 = vrot.slane %v772_v16, %v3375_v13  ;;  %v789_v37 = vrot.slane %v772_v16, %v3379_v15 }
 0x165   : > { %v1167_v2 = vpack.c.bf16 %v1166_v0, %v1166_v0 }
 0x166   : > { %2534 = vmatmul.mubr.msk.bf16.vlgmr.msra.gmra.mxu0 %vm717_vm0, %v763_v56  ;;  %2549 = vmatmul.mubr.msk.bf16.vlgmr.msra.gmra.mxu1 %vm717_vm0, %v763_v56 }
 0x167   : > { %893 = vmatpush1.bf16.msra.mxu0 %v2869_v54  ;;  %1295 = vmatpush1.bf16.msra.mxu1 %v2872_v55 }
 0x168   : > { %894 = vmatprep.subr.bf16.mxu0 %v2877_v57  ;;  %1296 = vmatprep.subr.bf16.mxu1 %v2880_v58  ;;  %v964_v57 = vrot.slane %v959_v17, %v3373_v12  ;;  %v968_v58 = vrot.slane %v959_v17, %v3377_v14 }
 0x169   : > { %912 = vmatprep.mubr.bf16.mxu0 %v3084_v30  ;;  %1314 = vmatprep.mubr.bf16.mxu1 %v3084_v30 }
 0x16b   : > { %895 = vmatpush1.bf16.msra.mxu0 %v2875_v61  ;;  %1297 = vmatpush1.bf16.msra.mxu1 %v2878_v62 }
 0x16c   : > { %1033 = vmatprep.subr.bf16.mxu0 %v2883_v63  ;;  %2724 = vmatprep.subr.bf16.mxu1 %v3085_v9 }
 0x16e   : > { %2535 = vmatmul.mubr.msk.bf16.vlgmr.msra.gmra.mxu0 %vm717_vm0, %v763_v56  ;;  %2565 = vmatmul.mubr.msk.bf16.vlgmr.msra.gmra.mxu1 %vm717_vm0, %v1167_v2 }
 0x16f   : > { %1034 = vmatpush1.bf16.msra.mxu0 %v2881_v1  ;;  %1053 = vmatprep.mubr.bf16.mxu0 %v3084_v30  ;;  %v1176_v1 = vld [vmem:[%s3741_s9] sm:$0xf] }
 0x170   : > { %1035 = vmatprep.subr.bf16.mxu0 %v2886_v3  ;;  %2726 = vmatprep.mubr.msk.bf16.mxu1 %vm3086_vm1, %v3085_v9 }
 0x173   : > { %1036 = vmatpush1.bf16.msra.mxu0 %v2884_v4  ;;  %v1181_v4 = vrot.slane %v1176_v1, %v3373_v12 }
 0x174   : > { %1253 = vmatprep.subr.bf16.mxu0 %v2889_v5 }
 0x176   : > { %2548 = vmatmul.mubr.msk.bf16.vlgmr.msra.gmra.mxu0 %vm717_vm0, %v763_v56 }
 0x177   : > { %1254 = vmatpush1.bf16.msra.mxu0 %v2887_v6  ;;  %1273 = vmatprep.mubr.bf16.mxu0 %v3084_v30 }
 0x178   : > { %1255 = vmatprep.subr.bf16.mxu0 %v2892_v7 }
 0x17b   : > { %1256 = vmatpush1.bf16.msra.mxu0 %v2890_v8 }
 0x17c   : > { %2718 = vmatprep.subr.bf16.mxu0 %v3085_v9 }
 0x17e   : > { %2564 = vmatmul.mubr.msk.bf16.vlgmr.msra.gmra.mxu0 %vm717_vm0, %v1167_v2 }
 0x17f   : > { %2720 = vmatprep.mubr.msk.bf16.mxu0 %vm3086_vm1, %v3085_v9 }
 0x226   : > { %v871_v22 = vpop.f32.mrf.mxu0  ;;  %v1098_v23 = vpop.f32.mrf.mxu1 }
 0x227   : > { %v872_v26 = vadd.f32 %v871_v22, %v777_v18  ;;  %v1099_v27 = vadd.f32 %v1098_v23, %v972_v19  ;;  %v1189_v23 = vrot.slane %v1176_v1, %v3375_v13 }
 0x228   : > { %v873_v24 = vpop.f32.mrf.mxu0  ;;  %v1100_v25 = vpop.f32.mrf.mxu1 }
 0x229   : > { %v874_v28 = vadd.f32 %v873_v24, %v781_v20  ;;  %v1101_v29 = vadd.f32 %v1100_v25, %v976_v21 }
 0x22a   : > { %v875_v30 = vpop.f32.mrf.mxu0  ;;  %v1102_v31 = vpop.f32.mrf.mxu1 }
 0x22b   : > { %v2638_v32 = vpack.c.bf16 %v874_v28, %v872_v26  ;;  %v2643_v33 = vpack.c.bf16 %v1101_v29, %v1099_v27  ;;  %v876_v38 = vadd.f32 %v875_v30, %v777_v18  ;;  %v1103_v39 = vadd.f32 %v1102_v31, %v972_v19 }
 0x22c   : > { %v877_v34 = vpop.f32.mrf.mxu0  ;;  %v1104_v35 = vpop.f32.mrf.mxu1  ;;  %v1185_v18 = vrot.slane %v1176_v1, %v3377_v14  ;;  %v1193_v27 = vrot.slane %v1176_v1, %v3379_v15 }
 0x22d   : > { %947 = vst [vmem:[#allocation2] sm:$0xff] %v2638_v32  ;;  %1132 = vst [vmem:[#allocation3 + $0x8] sm:$0xff] %v2643_v33  ;;  %v878_v40 = vadd.f32 %v877_v34, %v781_v20  ;;  %v1105_v41 = vadd.f32 %v1104_v35, %v976_v21 }
 0x22e   : > { %v914_v42 = vpop.f32.mrf.mxu0  ;;  %v1316_v43 = vpop.f32.mrf.mxu1 }
 0x22f   : > { %v2640_v44 = vpack.c.bf16 %v878_v40, %v876_v38  ;;  %v2645_v45 = vpack.c.bf16 %v1105_v41, %v1103_v39  ;;  %v915_v48 = vadd.f32 %v914_v42, %v785_v36  ;;  %v1317_v14 = vadd.f32 %v1316_v43, %v1189_v23 }
 0x230   : > { %v916_v46 = vpop.f32.mrf.mxu0  ;;  %v3393_v47 = vpop.f32.mrf.mxu1 }
 0x231   : > { %949 = vst [vmem:[#allocation2 + $0x10] sm:$0xff] %v2640_v44  ;;  %1134 = vst [vmem:[#allocation3 + $0x18] sm:$0xff] %v2645_v45  ;;  %v917_v49 = vadd.f32 %v916_v46, %v789_v37  ;;  %v1325_v26 = vpack.c.bf16 %v1317_v14, %v1317_v14  ;;  %v1319_v13 = vadd.f32 %v3393_v47, %v1193_v27 }
 0x232   : > { %v918_v50 = vpop.f32.mrf.mxu0  ;;  %v1320_v51 = vpop.f32.mrf.mxu1 }
 0x233   : > { %v2639_v52 = vpack.c.bf16 %v917_v49, %v915_v48  ;;  %v919_v55 = vadd.f32 %v918_v50, %v785_v36  ;;  %v1326_v29 = vpack.c.bf16 %v1319_v13, %v1319_v13 }
 0x234   : > { %v920_v53 = vpop.f32.mrf.mxu0  ;;  %v1321_v54 = vpop.f32.mrf.mxu1 }
 0x235   : > { %948 = vst [vmem:[#allocation2 + $0x8] sm:$0xff] %v2639_v52  ;;  %v921_v56 = vadd.f32 %v920_v53, %v789_v37 }
 0x236   : > { %v1055_v59 = vpop.f32.mrf.mxu0 }
 0x237   : > { %v2641_v60 = vpack.c.bf16 %v921_v56, %v919_v55  ;;  %v1056_v63 = vadd.f32 %v1055_v59, %v964_v57 }
 0x238   : > { %v1057_v61 = vpop.f32.mrf.mxu0  ;;  %v2893_v62 = vld [vmem:[#allocation2] ss:$16 sps:$4 sm:$0xff]   ;;  %v2894_v20 = vld [vmem:[#allocation2 + $0x4] ss:$16 sps:$4 sm:$0xff]   ;;  %v2899_v14 = vld [vmem:[#allocation3 + $0x8] ss:$16 sps:$4 sm:$0xff]  }
 0x239   : > { %950 = vst [vmem:[#allocation2 + $0x18] sm:$0xff] %v2641_v60  ;;  %v1058_v0 = vadd.f32 %v1057_v61, %v968_v58  ;;  %2719 = vmatpush3.bf16.xpose.msra.mxu0 %v2893_v62  ;;  %v2900_v13 = vld [vmem:[#allocation3 + $0xc] ss:$16 sps:$4 sm:$0xff]  }
 0x23a   : > { %v1059_v2 = vpop.f32.mrf.mxu0  ;;  %2730 = vmatprep.subr.bf16.mxu0 %v3085_v9 }
 0x23b   : > { %v2642_v3 = vpack.c.bf16 %v1058_v0, %v1056_v63  ;;  %v1060_v6 = vadd.f32 %v1059_v2, %v964_v57 }
 0x23c   : > { %v1061_v5 = vpop.f32.mrf.mxu0 }
 0x23d   : > { %1131 = vst [vmem:[#allocation3] sm:$0xff] %v2642_v3  ;;  %v1062_v7 = vadd.f32 %v1061_v5, %v968_v58  ;;  %v2901_v5 = vld [vmem:[%s3698_s14 + $0x78] sm:$0xff]  }
 0x23e   : > { %v1275_v8 = vpop.f32.mrf.mxu0 }
 0x23f   : > { %v2644_v10 = vpack.c.bf16 %v1062_v7, %v1060_v6  ;;  %v1276_v11 = vadd.f32 %v1275_v8, %v1181_v4  ;;  %v2902_v6 = vld [vmem:[%s3698_s14 + $0x38] sm:$0xff]   ;;  %v2903_v7 = vld [vmem:[%s3698_s14 + $0x70] sm:$0xff]  }
 0x240   : > { %v1277_v16 = vpop.f32.mrf.mxu0  ;;  %v2896_v25 = vld [vmem:[#allocation2 + $0x8] ss:$16 sps:$4 sm:$0xff]   ;;  %v2897_v28 = vld [vmem:[#allocation2 + $0xc] ss:$16 sps:$4 sm:$0xff]   ;;  %v2904_v8 = vld [vmem:[%s3698_s14 + $0x30] sm:$0xff]  }
 0x241   : > { %1133 = vst [vmem:[#allocation3 + $0x10] sm:$0xff] %v2644_v10  ;;  %v1323_v17 = vpack.c.bf16 %v1276_v11, %v1276_v11  ;;  %v1278_v12 = vadd.f32 %v1277_v16, %v1185_v18  ;;  %v2905_v10 = vld [vmem:[%s3698_s14 + $0x68] sm:$0xff]  }
 0x242   : > { %v1279_v19 = vpop.f32.mrf.mxu0  ;;  %v2906_v11 = vld [vmem:[%s3698_s14 + $0x28] sm:$0xff]  }
 0x243   : > { %2721 = vmatmul.mubr.bf16.vlgmr.msra.gmra.mxu0 %v1323_v17  ;;  %v1324_v24 = vpack.c.bf16 %v1278_v12, %v1278_v12 }
 0x244   : > { %2731 = vmatpush3.bf16.xpose.msra.mxu0 %v2894_v20  ;;  %v1280_v21 = vpop.f32.mrf.mxu0  ;;  %2732 = vmatprep.mubr.msk.bf16.mxu0 %vm3086_vm1, %v3085_v9 }
 0x245   : > { %2742 = vmatprep.subr.bf16.mxu0 %v3085_v9 }
 0x248   : > { %v2895_v22 = vld [vmem:[#allocation3] ss:$16 sps:$4 sm:$0xff]   ;;  %v2898_v12 = vld [vmem:[#allocation3 + $0x4] ss:$16 sps:$4 sm:$0xff]  }
 0x249   : > { %2725 = vmatpush3.bf16.msra.mxu1 %v2895_v22 }
 0x24a   : > { %2736 = vmatprep.subr.bf16.mxu1 %v3085_v9 }
 0x24b   : > { %2733 = vmatmul.mubr.bf16.vlgmr.msra.gmra.mxu0 %v1324_v24 }
 0x24c   : > { %2743 = vmatpush3.bf16.xpose.msra.mxu0 %v2896_v25  ;;  %2744 = vmatprep.mubr.msk.bf16.mxu0 %vm3086_vm1, %v3085_v9 }
 0x24d   : > { %2754 = vmatprep.subr.bf16.mxu0 %v3085_v9 }
 0x253   : > { %2745 = vmatmul.mubr.bf16.vlgmr.msra.gmra.mxu0 %v1325_v26 }
 0x254   : > { %2755 = vmatpush3.bf16.xpose.msra.mxu0 %v2897_v28  ;;  %2756 = vmatprep.mubr.msk.bf16.mxu0 %vm3086_vm1, %v3085_v9 }
 0x255   : > { %2662 = vmatprep.subr.bf16.mxu0 %v2901_v5 }
 0x25b   : > { %2757 = vmatmul.mubr.bf16.vlgmr.msra.gmra.mxu0 %v1326_v29 }
 0x25c   : > { %2663 = vmatpush3.bf16.msra.mxu0 %v2902_v6 }
 0x25d   : > { %2664 = vmatprep.subr.bf16.mxu0 %v2903_v7 }
 0x260   : > { %2665 = vmatpush3.bf16.msra.mxu0 %v2904_v8 }
 0x261   : > { %2666 = vmatprep.subr.bf16.mxu0 %v2905_v10 }
 0x264   : > { %2667 = vmatpush3.bf16.msra.mxu0 %v2906_v11 }
 0x303   : > { %v1371_v30 = vpop.f32.mrf.mxu0 }
 0x304   : > { %v1378_v31 = vsel %vm1377_vm2, %v1371_v30, -inf }
 0x305   : > { %1379 = vmax.xlane.f32.xlu0 %v1378_v31  ;;  %v2722_v32 = vpop.f32.mrf.mxu0 }
 0x307   : > { %v1374_v33 = vpop.f32.mrf.mxu0 }
 0x309   : > { %v2723_v34 = vpop.f32.mrf.mxu0 }
 0x30b   : > { %v1486_v35 = vpop.f32.mrf.mxu0 }
 0x30c   : > { %v1492_v15 = vsel %vm1377_vm2, %v1486_v35, -inf }
 0x30d   : > { %1493 = vmax.xlane.f32.xlu1 %v1492_v15  ;;  %v2734_v36 = vpop.f32.mrf.mxu0  ;;  %v2907_v15 = vld [vmem:[%s3698_s14 + $0x60] sm:$0xff]  }
 0x30e   : > { %v2908_v36 = vld [vmem:[%s3698_s14 + $0x20] sm:$0xff]   ;;  %2668 = vmatprep.subr.bf16.mxu0 %v2907_v15 }
 0x30f   : > { %v1489_v37 = vpop.f32.mrf.mxu0  ;;  %2669 = vmatpush3.bf16.msra.mxu0 %v2908_v36 }
 0x310   : > { %v2909_v37 = vld [vmem:[%s3698_s14 + $0x58] sm:$0xff]  }
 0x311   : > { %v2735_v38 = vpop.f32.mrf.mxu0  ;;  %2670 = vmatprep.subr.bf16.mxu0 %v2909_v37  ;;  %v2975_v37 = vld [vmem:[%s3262_s23] sm:$0xff]  ;;  %s2370_s23 = scalar_lea.sflag [#allocation8], %s3453_s22 }
 0x312   : > { %v2910_v38 = vld [vmem:[%s3698_s14 + $0xf8] sm:$0xff]  }
 0x313   : > { %v1600_v39 = vpop.f32.mrf.mxu0 }
 0x314   : > { %v1606_v40 = vsel %vm1377_vm2, %v1600_v39, -inf }
 0x315   : > { %1607 = vmax.xlane.f32.xlu0 %v1606_v40  ;;  %v2746_v41 = vpop.f32.mrf.mxu0  ;;  %v2912_v40 = vld [vmem:[%s3698_s14 + $0xb8] sm:$0xff]  }
 0x316   : > { %v2913_v41 = vld [vmem:[%s3698_s14 + $0x50] sm:$0xff]  }
 0x317   : > { %v1603_v42 = vpop.f32.mrf.mxu0 }
 0x318   : > { %v2914_v42 = vld [vmem:[%s3698_s14 + $0xf0] sm:$0xff]  }
 0x319   : > { %v2747_v43 = vpop.f32.mrf.mxu0 }
 0x31a   : > { %v2915_v43 = vld [vmem:[%s3698_s14 + $0x10] sm:$0xff]  }
 0x31b   : > { %v1714_v44 = vpop.f32.mrf.mxu0 }
 0x31c   : > { %v1720_v45 = vsel %vm1377_vm2, %v1714_v44, -inf }
 0x31d   : > { %1721 = vmax.xlane.f32.xlu1 %v1720_v45  ;;  %v2758_v46 = vpop.f32.mrf.mxu0  ;;  %v2917_v45 = vld [vmem:[%s3698_s14 + $0x48] sm:$0xff]  }
 0x31e   : > { %v2918_v46 = vld [vmem:[%s3698_s14 + $0xe8] sm:$0xff]  }
 0x31f   : > { %v1717_v47 = vpop.f32.mrf.mxu0 }
 0x320   : > { %v2919_v47 = vld [vmem:[%s3698_s14 + $0x8] sm:$0xff]  }
 0x321   : > { %v2759_v48 = vpop.f32.mrf.mxu0 }
 0x322   : > { %v2920_v48 = vld [vmem:[%s3698_s14 + $0xa8] sm:$0xff]  }
 0x38e   : > { %v1380_v49 = vpop.xlane.xlu0 %1379 }
 0x38f   : > { %v1381_v50 = vsub.f32 %v1371_v30, %v1380_v49  ;;  %v2921_v49 = vld [vmem:[%s3698_s14 + $0x40] sm:$0xff]  }
 0x391   : > { %v1382_v51 = vmul.f32 1.442695, %v1381_v50  ;;  %v2922_v50 = vld [vmem:[%s3698_s14 + $0xe0] sm:$0xff]  }
 0x393   : > { %2953 = vpow2.f32 %v1382_v51  ;;  %v2923_v51 = vld [vmem:[%s3698_s14] sm:$0xff]  }
 0x396   : > { %v1494_v52 = vpop.xlane.xlu1 %1493 }
 0x397   : > { %v1495_v53 = vsub.f32 %v1486_v35, %v1494_v52  ;;  %v2924_v52 = vld [vmem:[%s3698_s14 + $0xa0] sm:$0xff]  }
 0x399   : > { %v1496_v54 = vmul.f32 1.442695, %v1495_v53  ;;  %v2927_v53 = vld [vmem:[%s3698_s14 + $0xd8] sm:$0xff]  }
 0x39b   : > { %2955 = vpow2.f32 %v1496_v54  ;;  %v2928_v54 = vld [vmem:[%s3698_s14 + $0x98] sm:$0xff]  }
 0x39e   : > { %v1608_v55 = vpop.xlane.xlu0 %1607 }
 0x39f   : > { %v1609_v56 = vsub.f32 %v1600_v39, %v1608_v55  ;;  %v2911_v39 = vld [vmem:[%s3698_s14 + $0x18] sm:$0xff]   ;;  %v2929_v55 = vld [vmem:[%s3698_s14 + $0xd0] sm:$0xff]  }
 0x3a0   : > { %v2954_v57 = vpop.eup %2953  ;;  %2671 = vmatpush3.bf16.msra.mxu0 %v2911_v39 }
 0x3a1   : > { %v1610_v58 = vmul.f32 1.442695, %v1609_v56  ;;  %v1384_v59 = vsel %vm1377_vm2, %v2954_v57, 0.0  ;;  %2672 = vmatprep.subr.bf16.mxu0 %v2913_v41  ;;  %v2930_v56 = vld [vmem:[%s3698_s14 + $0x90] sm:$0xff]  }
 0x3a2   : > { %1385 = vadd.xlane.f32.xlu0 %v1384_v59  ;;  %v2933_v59 = vld [vmem:[%s3698_s14 + $0xc0] sm:$0xff]  }
 0x3a3   : > { %2957 = vpow2.f32 %v1610_v58  ;;  %v2932_v58 = vld [vmem:[%s3698_s14 + $0x88] sm:$0xff]  }
 0x3a4   : > { %2673 = vmatpush3.bf16.msra.mxu0 %v2915_v43 }
 0x3a5   : > { %2674 = vmatprep.subr.bf16.mxu0 %v2917_v45  ;;  %v2937_v45 = vld [vmem:[%s3700_s16 + $0x8] sm:$0xff]  }
 0x3a6   : > { %v1722_v60 = vpop.xlane.xlu1 %1721 }
 0x3a7   : > { %v1723_v61 = vsub.f32 %v1714_v44, %v1722_v60  ;;  %v2916_v44 = vld [vmem:[%s3698_s14 + $0xb0] sm:$0xff]   ;;  %v2934_v60 = vld [vmem:[%s3698_s14 + $0x80] sm:$0xff]  }
 0x3a8   : > { %v2956_v62 = vpop.eup %2955  ;;  %2675 = vmatpush3.bf16.msra.mxu0 %v2919_v47 }
 0x3a9   : > { %v1724_v63 = vmul.f32 1.442695, %v1723_v61  ;;  %v1498_v0 = vsel %vm1377_vm2, %v2956_v62, 0.0  ;;  %2676 = vmatprep.subr.bf16.mxu0 %v2921_v49 }
 0x3aa   : > { %1499 = vadd.xlane.f32.xlu1 %v1498_v0 }
 0x3ab   : > { %2959 = vpow2.f32 %v1724_v63 }
 0x3ac   : > { %2677 = vmatpush3.bf16.msra.mxu0 %v2923_v51  ;;  %v2615_v51 = vld [vmem:[%s3742_s19] ss:$0 sm:$0xff]  ;;  %s3713_s19 = sshll.u32 %s3074_s27, 7 }
 0x3ad   : > { %2766 = vmatprep.subr.bf16.mxu0 %v3085_v9 }
 0x3b0   : > { %v2958_v1 = vpop.eup %2957 }
 0x3b1   : > { %v1612_v2 = vsel %vm1377_vm2, %v2958_v1, 0.0 }
 0x3b2   : > { %1613 = vadd.xlane.f32.xlu0 %v1612_v2 }
 0x3b8   : > { %v2960_v3 = vpop.eup %2959 }
 0x3b9   : > { %v1726_v4 = vsel %vm1377_vm2, %v2960_v3, 0.0 }
 0x3ba   : > { %1727 = vadd.xlane.f32.xlu1 %v1726_v4 }
 0x42b   : > { %v1386_v16 = vpop.xlane.xlu0 %1385 }
 0x42c   : > { %2961 = vrcp.f32 %v1386_v16 }
 0x433   : > { %v1500_v17 = vpop.xlane.xlu1 %1499 }
 0x434   : > { %2963 = vrcp.f32 %v1500_v17 }
 0x439   : > { %v2962_v18 = vpop.eup %2961 }
 0x43a   : > { %v1388_v19 = vmul.f32 %v2962_v18, %v2954_v57  ;;  %v2931_v57 = vld [vmem:[%s3698_s14 + $0xc8] sm:$0xff]  }
 0x43b   : > { %v1614_v20 = vpop.xlane.xlu0 %1613 }
 0x43c   : > { %2965 = vrcp.f32 %v1614_v20  ;;  %v1390_v21 = vpack.c.bf16 %v1388_v19, %v1388_v19 }
 0x43e   : > { %2727 = vmatmul.mubr.msk.bf16.vlgmr.msra.gmra.mxu1 %vm1377_vm2, %v1390_v21 }
 0x43f   : > { %2737 = vmatpush3.bf16.msra.mxu1 %v2898_v12  ;;  %2738 = vmatprep.mubr.msk.bf16.mxu1 %vm3086_vm1, %v3085_v9 }
 0x440   : > { %2748 = vmatprep.subr.bf16.mxu1 %v3085_v9 }
 0x441   : > { %v2964_v22 = vpop.eup %2963 }
 0x442   : > { %v1502_v23 = vmul.f32 %v2964_v22, %v2956_v62 }
 0x443   : > { %v1728_v24 = vpop.xlane.xlu1 %1727 }
 0x444   : > { %2967 = vrcp.f32 %v1728_v24  ;;  %v1504_v25 = vpack.c.bf16 %v1502_v23, %v1502_v23  ;;  %v1503_v29 = vadd.f32 %v1502_v23, %v1388_v19 }
 0x446   : > { %2739 = vmatmul.mubr.msk.bf16.vlgmr.msra.gmra.mxu1 %vm1377_vm2, %v1504_v25 }
 0x447   : > { %2749 = vmatpush3.bf16.msra.mxu1 %v2899_v14  ;;  %2750 = vmatprep.mubr.msk.bf16.mxu1 %vm3086_vm1, %v3085_v9 }
 0x448   : > { %2760 = vmatprep.subr.bf16.mxu1 %v3085_v9 }
 0x449   : > { %v2966_v26 = vpop.eup %2965 }
 0x44a   : > { %v1616_v27 = vmul.f32 %v2966_v26, %v2958_v1 }
 0x44c   : > { %v1618_v28 = vpack.c.bf16 %v1616_v27, %v1616_v27  ;;  %v1617_v32 = vadd.f32 %v1616_v27, %v1503_v29 }
 0x44e   : > { %2751 = vmatmul.mubr.msk.bf16.vlgmr.msra.gmra.mxu1 %vm1377_vm2, %v1618_v28 }
 0x44f   : > { %2761 = vmatpush3.bf16.msra.mxu1 %v2900_v13  ;;  %2762 = vmatprep.mubr.msk.bf16.mxu1 %vm3086_vm1, %v3085_v9 }
 0x450   : > { %2684 = vmatprep.subr.bf16.mxu1 %v2910_v38 }
 0x451   : > { %v2968_v30 = vpop.eup %2967 }
 0x452   : > { %v1730_v31 = vmul.f32 %v2968_v30, %v2960_v3  ;;  %v2578_v30 = vld [vmem:[%s3699_s15] ss:$0 sm:$0xff] }
 0x454   : > { %v1732_v33 = vpack.c.bf16 %v1730_v31, %v1730_v31  ;;  %v1731_v34 = vadd.f32 %v1730_v31, %v1617_v32 }
 0x456   : > { %2763 = vmatmul.mubr.msk.bf16.vlgmr.msra.gmra.mxu1 %vm1377_vm2, %v1732_v33  ;;  %v1784_v35 = vmul.f32 0.25, %v1731_v34 }
 0x457   : > { %2685 = vmatpush3.bf16.msra.mxu1 %v2912_v40 }
 0x458   : > { %1785 = vst.msk [vmem:[%s3459_s20] sm:$0xff] %vm1377_vm2, %v1784_v35  ;;  %2686 = vmatprep.subr.bf16.mxu1 %v2914_v42 }
 0x45b   : > { %2687 = vmatpush3.bf16.msra.mxu1 %v2916_v44 }
 0x45c   : > { %2688 = vmatprep.subr.bf16.mxu1 %v2918_v46  ;;  %v2938_v46 = vld [vmem:[%s3700_s16] sm:$0xff]  }
 0x45f   : > { %2689 = vmatpush3.bf16.msra.mxu1 %v2920_v48 }
 0x460   : > { %2690 = vmatprep.subr.bf16.mxu1 %v2922_v50 }
 0x463   : > { %2691 = vmatpush3.bf16.msra.mxu1 %v2924_v52 }
 0x464   : > { %2692 = vmatprep.subr.bf16.mxu1 %v2927_v53  ;;  %v2616_v53 = vld [vmem:[%s3743_s3] ss:$0 sm:$0xff]  ;;  %s3744_s3 = sld [smem:[#allocation27_spill]] }
 0x467   : > { %2693 = vmatpush3.bf16.msra.mxu1 %v2928_v54 }
 0x468   : > { %2694 = vmatprep.subr.bf16.mxu1 %v2929_v55 }
 0x46a   : > { %s3745_s4 = smov %s3744_s3  ;;  %s2396_s30 = scalar_lea.hbm %s3744_s3, %s3713_s19 }
 0x46b   : > { %2695 = vmatpush3.bf16.msra.mxu1 %v2930_v56 }
 0x46c   : > { %2696 = vmatprep.subr.bf16.mxu1 %v2931_v57  ;;  %v2939_v57 = vld [vmem:[%s3702_s18 + $0x38] sm:$0xff]  }
 0x46f   : > { %2697 = vmatpush3.bf16.msra.mxu1 %v2932_v58  ;;  %v2940_v58 = vld [vmem:[%s3702_s18 + $0x30] sm:$0xff]  }
 0x470   : > { %2698 = vmatprep.subr.bf16.mxu1 %v2933_v59  ;;  %v2941_v59 = vld [vmem:[%s3702_s18 + $0x28] sm:$0xff]  }
 0x473   : > { %2699 = vmatpush3.bf16.msra.mxu1 %v2934_v60  ;;  %v2942_v60 = vld [vmem:[%s3702_s18 + $0x20] sm:$0xff]  }
 0x474   : > { %2774 = vmatprep.subr.bf16.mxu1 %v3085_v9 }
 0x4fe   : > { %v1434_v61 = vpop.f32.mrf.mxu1 }
 0x4ff   : > { %v1440_v62 = vpack.c.bf16 %v1434_v61, %v1434_v61  ;;  %v2943_v61 = vld [vmem:[%s3702_s18 + $0x18] sm:$0xff]  }
 0x500   : > { %v2728_v63 = vpop.f32.mrf.mxu1 }
 0x501   : > { %1441 = vst [vmem:[#allocation4] sm:$0xf] %v1440_v62  ;;  %v2944_v62 = vld [vmem:[%s3702_s18 + $0x10] sm:$0xff]   ;;  %v2945_v63 = vld [vmem:[%s3702_s18 + $0x8] sm:$0xff]  }
 0x502   : > { %v1437_v0 = vpop.f32.mrf.mxu1 }
 0x503   : > { %v2946_v0 = vld [vmem:[%s3702_s18] sm:$0xff]  }
 0x504   : > { %v2729_v1 = vpop.f32.mrf.mxu1 }
 0x505   : > { %v2617_v1 = vld [vmem:[%s3701_s17] ss:$0 sm:$0xff] }
 0x506   : > { %v1548_v2 = vpop.f32.mrf.mxu1 }
 0x507   : > { %v1554_v3 = vpack.c.bf16 %v1548_v2, %v1548_v2 }
 0x508   : > { %v2740_v4 = vpop.f32.mrf.mxu1 }
 0x509   : > { %1555 = vst [vmem:[#allocation4 + $0x4] sm:$0xf] %v1554_v3 }
 0x50a   : > { %v1551_v5 = vpop.f32.mrf.mxu1 }
 0x50c   : > { %v2741_v6 = vpop.f32.mrf.mxu1 }
 0x50e   : > { %v1662_v7 = vpop.f32.mrf.mxu1 }
 0x50f   : > { %v1668_v8 = vpack.c.bf16 %v1662_v7, %v1662_v7 }
 0x510   : > { %v2752_v10 = vpop.f32.mrf.mxu1  ;;  %v1786_v11 = vld [vmem:[#allocation4] sm:$0xff] }
 0x511   : > { %1669 = vst [vmem:[#allocation4 + $0x8] sm:$0xf] %v1668_v8  ;;  %v2579_v16 = vcombine.low %v1786_v11, %v1786_v11  ;;  %v2580_v17 = vcombine.high %v1786_v11, %v1786_v11 }
 0x512   : > { %v1665_v18 = vpop.f32.mrf.mxu1 }
 0x513   : > { %2097 = vmatprep.mubr.bf16.mxu0 %v2580_v17 }
 0x514   : > { %v2753_v19 = vpop.f32.mrf.mxu1  ;;  %2098 = vmatmul.mubr.bf16.vlgmr.msra.gmra.mxu0 %v2579_v16 }
 0x515   : > { %2770 = vmatprep.mubr.msk.bf16.mxu0 %vm3086_vm1, %v3085_v9  ;;  %2767 = vmatpush3.bf16.msra.mxu0 %v2937_v45 }
 0x516   : > { %v1776_v20 = vpop.f32.mrf.mxu1  ;;  %2768 = vmatprep.subr.bf16.mxu0 %v3085_v9 }
 0x517   : > { %v1782_v21 = vpack.c.bf16 %v1776_v20, %v1776_v20 }
 0x518   : > { %v2764_v12 = vpop.f32.mrf.mxu1 }
 0x519   : > { %1783 = vst [vmem:[#allocation4 + $0xc] sm:$0xf] %v1782_v21  ;;  %2769 = vmatpush3.bf16.msra.mxu0 %v2938_v46 }
 0x51a   : > { %v1779_v22 = vpop.f32.mrf.mxu1 }
 0x51c   : > { %v2765_v23 = vpop.f32.mrf.mxu1 }
 0x520   : > { %v1787_v24 = vld [vmem:[#allocation4 + $0x8] sm:$0xff] }
 0x521   : > { %v2581_v25 = vcombine.low %v1787_v24, %v1787_v24  ;;  %v2582_v14 = vcombine.high %v1787_v24, %v1787_v24 }
 0x523   : > { %2137 = vmatprep.mubr.bf16.mxu1 %v2582_v14 }
 0x524   : > { %2138 = vmatmul.mubr.bf16.vlgmr.msra.gmra.mxu1 %v2581_v25 }
 0x525   : > { %2790 = vmatprep.mubr.msk.bf16.mxu1 %vm3086_vm1, %v3085_v9  ;;  %2775 = vmatpush3.bf16.msra.mxu1 %v2939_v57 }
 0x526   : > { %2776 = vmatprep.subr.bf16.mxu1 %v3085_v9 }
 0x529   : > { %2777 = vmatpush3.bf16.msra.mxu1 %v2940_v58 }
 0x52a   : > { %2778 = vmatprep.subr.bf16.mxu1 %v3085_v9 }
 0x52d   : > { %2779 = vmatpush3.bf16.msra.mxu1 %v2941_v59 }
 0x52e   : > { %2780 = vmatprep.subr.bf16.mxu1 %v3085_v9 }
 0x531   : > { %2781 = vmatpush3.bf16.msra.mxu1 %v2942_v60 }
 0x532   : > { %2782 = vmatprep.subr.bf16.mxu1 %v3085_v9 }
 0x535   : > { %2783 = vmatpush3.bf16.msra.mxu1 %v2943_v61 }
 0x536   : > { %2784 = vmatprep.subr.bf16.mxu1 %v3085_v9 }
 0x539   : > { %2785 = vmatpush3.bf16.msra.mxu1 %v2944_v62 }
 0x53a   : > { %2786 = vmatprep.subr.bf16.mxu1 %v3085_v9 }
 0x53d   : > { %2787 = vmatpush3.bf16.msra.mxu1 %v2945_v63 }
 0x53e   : > { %2788 = vmatprep.subr.bf16.mxu1 %v3085_v9 }
 0x541   : > { %2789 = vmatpush3.bf16.msra.mxu1 %v2946_v0 }
 0x5d4   : > { %v2678_v26 = vpop.f32.mrf.mxu0 }
 0x5d6   : > { %v2679_v27 = vpop.f32.mrf.mxu0 }
 0x5d7   : > { %v2680_v29 = vadd.f32 %v2679_v27, %v2678_v26 }
 0x5d8   : > { %v2681_v28 = vpop.f32.mrf.mxu0 }
 0x5d9   : > { %v2100_v33 = vadd.f32 %v2680_v29, %v2578_v30 }
 0x5da   : > { %v2682_v13 = vpop.f32.mrf.mxu0 }
 0x5e4   : > { %v2700_v31 = vpop.f32.mrf.mxu1 }
 0x5e6   : > { %v2701_v32 = vpop.f32.mrf.mxu1 }
 0x5e7   : > { %v2702_v34 = vadd.f32 %v2701_v32, %v2700_v31 }
 0x5e8   : > { %v2703_v35 = vpop.f32.mrf.mxu1 }
 0x5e9   : > { %v2140_v15 = vadd.f32 %v2702_v34, %v2100_v33 }
 0x5ea   : > { %v2704_v36 = vpop.f32.mrf.mxu1 }
 0x5eb   : > { %v3551_v38 = vadd.f32 %v2975_v37, %v2140_v15 }
 0x5ed   : > { %v2146_v39 = vsel %vm717_vm0, %v3551_v38, 0.0 }
 0x5ee   : > { %2147 = vadd.xlane.f32.xlu0 %v2146_v39 }
 0x677   : > { %v2148_v40 = vpop.xlane.xlu0 %2147 }
 0x678   : > { %v2149_v41 = vmul.f32 0.03125, %v2148_v40 }
 0x67a   : > { %v2150_v42 = vsub.f32 %v3551_v38, %v2149_v41 }
 0x67c   : > { %v2151_v43 = vmul.f32 %v2150_v42, %v2150_v42 }
 0x67e   : > { %v2152_v44 = vsel %vm717_vm0, %v2151_v43, 0.0 }
 0x67f   : > { %2153 = vadd.xlane.f32.xlu1 %v2152_v44 }
 0x708   : > { %v2154_v47 = vpop.xlane.xlu1 %2153 }
 0x709   : > { %v2155_v48 = vmul.f32 0.03125, %v2154_v47 }
 0x70b   : > { %v2156_v49 = vadd.f32 1e-05, %v2155_v48 }
 0x70d   : > { %2969 = vrsqrt.f32 %v2156_v49 }
 0x71a   : > { %v2970_v50 = vpop.eup %2969 }
 0x71b   : > { %v2158_v52 = vmul.f32 %v2970_v50, %v2150_v42 }
 0x71d   : > { %v2166_v54 = vmul.f32 %v2615_v51, %v2158_v52 }
 0x71f   : > { %v2174_v55 = vadd.f32 %v2616_v53, %v2166_v54 }
 0x721   : > { %v2175_v56 = vpack.c.bf16 %v2174_v55, %v2174_v55 }
 0x723   : > { %2771 = vmatmul.mubr.msk.bf16.vlgmr.msra.gmra.mxu0 %vm717_vm0, %v2175_v56 }
 0x7e3   : > { %v2236_v2 = vpop.f32.mrf.mxu0 }
 0x7e4   : > { %v2237_v3 = vadd.f32 %v2617_v1, %v2236_v2 }
 0x7e5   : > { %v2772_v4 = vpop.f32.mrf.mxu0 }
 0x7e6   : > { %v2621_v5 = vmul.f32 -1.702, %v2237_v3 }
 0x7e7   : > { %v2239_v6 = vpop.f32.mrf.mxu0 }
 0x7e8   : > { %v2244_v7 = vmul.f32 1.442695, %v2621_v5 }
 0x7e9   : > { %v2773_v9 = vpop.f32.mrf.mxu0 }
 0x7ea   : > { %2971 = vpow2.f32 %v2244_v7 }
 0x7f7   : > { %v2972_v8 = vpop.eup %2971 }
 0x7f8   : > { %v2246_v10 = vadd.f32 1.0, %v2972_v8 }
 0x7fa   : > { %2973 = vrcp.f32 %v2246_v10 }
 0x807   : > { %v2974_v11 = vpop.eup %2973 }
 0x808   : > { %v2249_v16 = vmul.f32 %v2974_v11, %v2237_v3 }
 0x80a   : > { %v2250_v17 = vpack.c.bf16 %v2249_v16, %v2249_v16 }
 0x80c   : > { %2791 = vmatmul.mubr.bf16.vlgmr.msra.gmra.mxu1 %v2250_v17 }
 0x80d   : > { %2989 = shalt.err (!%p2986_p5)
}
 0x80e   : > { %s2990_s8 = scalar_lea.hbm %s2396_s30, 128  ;;  %s2994_s2 = scalar_lea.hbm %s3745_s4, 256 }
 0x80f   : > { %p2991_p6 = scmp.ne.s32.totalorder %s2396_s30, %s2990_s8  ;;  %p2995_p10 = scmp.lt.s32.totalorder %s2396_s30, %s3745_s4 }
 0x810   : > { %p2996_p11 = scmp.lt.s32.totalorder %s2994_s2, %s2990_s8 }
 0x811   : > { %p2992_p7 = pnand %p2991_p6, %p3239_p4 }
 0x812   : > { %p2997_p12 = por %p2996_p11, %p2995_p10 }
 0x813   : > { %p2993_p9 = pneg %p2992_p7 }
 0x815   : > { %p2998_p13 = pnand %p2997_p12, %p2993_p9 }
 0x817   : > { %3001 = shalt.err (!%p2998_p13)
}
 0x818   : > { %2795 = dma.vmem_to_hbm [thread:$0]  (%p3239_p4), %s2399_s24, 128, %s2396_s30, %s2370_s23  }
 0x819   : > { %s3746_s0 = sld [smem:[#allocation25_spill]]  ;;  %s3747_s6 = sshll.u32 %s3453_s22, 3 }
 0x81a   : > { %s690_s20 = scalar_lea.vmem [#allocation5], %s3747_s6  ;;  %s3748_s8 = sshll.u32 %s3074_s27, 7 }
 0x81b   : > { %s2384_s19 = sshll.u32 %s690_s20, 4  ;;  %s3749_s3 = sld [smem:[#allocation26_spill]]  ;;  %s3638_s19 = int_to_ptr.vmem [resolvable:$true] %s2384_s19 }
 0x81c   : > { %s2365_s30 = scalar_lea.sflag [#allocation6], %s3453_s22  ;;  %s3002_s24 = scalar_lea.vmem %s3638_s19, 128 }
 0x81d   : > { %p3003_p0 = scmp.ne.s32.totalorder %s3638_s19, %s3002_s24  ;;  %s3088_s27 = smov [#allocation5]  }
 0x81e   : > { %s3006_s23 = sshll.u32 %s3088_s27, 4  ;;  %s3007_s23 = int_to_ptr.vmem [resolvable:$false] %s3006_s23 }
 0x81f   : > { %v2622_v18 = vld [vmem:[%s3746_s0] ss:$0 sm:$0xff]  ;;  %p3004_p1 = pnand %p3003_p0, %p3239_p4  ;;  %s3008_s7 = scalar_lea.vmem %s3007_s23, 256 }
 0x820   : > { %p3009_p3 = scmp.lt.s32.totalorder %s3638_s19, %s3007_s23  ;;  %p3010_p5 = scmp.lt.s32.totalorder %s3008_s7, %s3002_s24 }
 0x821   : > { %s3750_s4 = smov %s3749_s3  ;;  %s3636_s9 = scalar_lea.hbm %s3749_s3, %s3748_s8 }
 0x822   : > { %p3005_p2 = pneg %p3004_p1  ;;  %p3011_p6 = por %p3010_p5, %p3009_p3 }
 0x824   : > { %p3012_p7 = pnand %p3011_p6, %p3005_p2 }
 0x8cc   : > { %v2356_v19 = vpop.f32.mrf.mxu1 }
 0x8cd   : > { %v2357_v20 = vadd.f32 %v2622_v18, %v2356_v19 }
 0x8ce   : > { %v2792_v21 = vpop.f32.mrf.mxu1 }
 0x8cf   : > { %v2362_v12 = vadd.f32 %v2357_v20, %v3551_v38 }
 0x8d0   : > { %v2359_v22 = vpop.f32.mrf.mxu1 }
 0x8d1   : > { %2363 = vst.msk [vmem:[%s690_s20] sm:$0xff] %vm717_vm0, %v2362_v12 }
 0x8d2   : > { %v2793_v23 = vpop.f32.mrf.mxu1 }
 0x8d3   : > { %3015 = shalt.err (!%p3012_p7)
}
 0x8d4   : > { %s3016_s29 = scalar_lea.hbm %s3636_s9, 128  ;;  %s3020_s6 = scalar_lea.hbm %s3750_s4, 256 }
 0x8d5   : > { %p3017_p9 = scmp.ne.s32.totalorder %s3636_s9, %s3016_s29  ;;  %p3021_p12 = scmp.lt.s32.totalorder %s3636_s9, %s3750_s4 }
 0x8d6   : > { %p3022_p13 = scmp.lt.s32.totalorder %s3020_s6, %s3016_s29 }
 0x8d7   : > { %p3018_p10 = pnand %p3017_p9, %p3239_p4 }
 0x8d8   : > { %p3023_p0 = por %p3022_p13, %p3021_p12 }
 0x8d9   : > { %p3019_p11 = pneg %p3018_p10 }
 0x8db   : > { %p3024_p1 = pnand %p3023_p0, %p3019_p11 }
 0x8dd   : > { %3027 = shalt.err (!%p3024_p1)
}
 0x8de   : > { %2794 = dma.vmem_to_hbm [thread:$0]  (%p3239_p4), %s3638_s19, 128, %s3636_s9, %s2365_s30  }
 0x8df PF: > { %s3751_s21 = sld [smem:[#allocation11_spill]]  ;;  %p2805_p2 = scmp.ge.s32.totalorder %s3082_s28, 2 }
 0x8e1   : > { %p2799_p3 = pnand %p2805_p2, %p3246_p8 }
 0x8e3   : > { %p2800_p5 = pneg %p2799_p3 }
 0x8e5   : > { %s2410_s3 = sand.u32 1, %s3751_s21  }
 0x8e6   : > { %s2411_s24 = scalar_lea.sflag [#allocation6], %s2410_s3 }
 0x8e7   : > { %3053 = dma.done.wait (%p2800_p5), %s2411_s24, 128  }
 0x8e8   : > { %3055 = vsyncadd (%p2800_p5), %s2411_s24, 4294967168  ;;  %s2420_s27 = scalar_lea.sflag [#allocation8], %s2410_s3 }
 0x8e9   : > { %3057 = dma.done.wait (%p2800_p5), %s2420_s27, 128  }
 0x8ea   : > { %3059 = vsyncadd (%p2800_p5), %s2420_s27, 4294967168  ;;  %s38_s28 = sadd.s32 1, %s3082_s28   ;;  %s3753_s27 = sld [smem:[#allocation12_spill]] }
 0x8eb   : > { %p35_p6 = scmp.ge.s32.totalorder %s38_s28, 4   ;;  %s3754_s3 = sld [smem:[#allocation13_spill]] }
 0x8ec   : > { %s3755_s2 = smov %s3066_s25  ;;  %s3756_s25 = smov %s3070_s26 }
 0x8ed   : > { %s3757_s26 = smov %s3252_s1  ;;  %37 = sbr.rel (!%p35_p6) target bundleno = 20 (0x14), region = 159 }
 0x8f2   :  { %2425 = vsyncpa [#allocation6], 1 }
 0x8f3   :  { %2427 = vsyncpa [#allocation6 + $0x1], 1 }
 0x8f4   :  { %2428 = vsyncpa [#allocation8], 1 }
 0x8f5   :  { %2430 = vsyncpa [#allocation8 + $0x1], 1 }

</bundles_post_ra>
